<compile_context>
chip_gen: v5e
topology: v5e:2x2
jax: 0.10.0
libtpu: 0.0.40
codegen_flags: <defaults>
</compile_context>

<pallas_src>
import numpy as np
import jax
import jax.numpy as jnp
from jax import lax
from jax.experimental import pallas as pl
from jax.experimental.pallas import tpu as pltpu

EPS = 1e-5  # PyTorch BatchNorm2d default eps


# ------------------------------ Pallas kernel ------------------------------- #

def _make_kernel(H, W):
    """Fused bottleneck kernel (closure over spatial size for the 3x3 shift offsets)."""

    def kernel(x_ref, w1_ref, g1_ref, b1_ref,
               w2_ref, g2_ref, b2_ref, m2_ref,
               wm_ref, gm_ref, bm_ref, o_ref):
        R = x_ref.shape[1]            # N*H*W rows, on the lane axis
        cs = w1_ref.shape[0]          # squeeze channels
        cout = o_ref.shape[0]         # output channels
        inv_n = 1.0 / R

        def bn(y, gamma, beta):
            # Single-pass training-mode BatchNorm over the row (lane) axis, f32.
            s = jnp.sum(y, axis=1, keepdims=True)
            ss = jnp.sum(y * y, axis=1, keepdims=True)
            mean = s * inv_n
            var = ss * inv_n - mean * mean          # biased variance
            return (y - mean) * lax.rsqrt(var + EPS) * gamma + beta

        x = x_ref[...]                                                   # (Cin, R)

        # conv1: 1x1 conv == (Cs, Cin) @ (Cin, R), then BN + ReLU.
        f1 = jnp.dot(w1_ref[...], x, preferred_element_type=jnp.float32)
        f1 = jnp.maximum(bn(f1, g1_ref[...], b1_ref[...]), 0.0)          # (Cs, R)

        # conv2: 3x3 conv (stride 1, pad 1) as 9 shifted matmuls entirely in VMEM.
        # Row r = (n, h, w); tap (dy, dx) needs f1[:, r + dy*W + dx], zero-masked
        # at image borders (masks are precomputed, 0/1 f32, exact).
        masks = m2_ref[...]                                              # (9, R)
        w2 = w2_ref[...]                                                 # (9, Cs, Cs)
        acc = jnp.zeros((cs, R), jnp.float32)
        for k in range(9):
            dy, dx = k // 3 - 1, k % 3 - 1
            off = dy * W + dx
            sh = f1 if off == 0 else pltpu.roll(f1, shift=(-off) % R, axis=1)
            sh = sh * masks[k:k + 1, :]
            acc = acc + jnp.dot(w2[k], sh, preferred_element_type=jnp.float32)
        f2 = jnp.maximum(bn(acc, g2_ref[...], b2_ref[...]), 0.0)         # (Cs, R)

        # conv3 + projection shortcut merged into ONE matmul with a block-diagonal
        # weight (2*Cout, Cin+Cs) acting on [x ; f2], then one BN over 2*Cout channels.
        cat = jnp.concatenate([x, f2], axis=0)                           # (Cin+Cs, R)
        y = jnp.dot(wm_ref[...], cat, preferred_element_type=jnp.float32)  # (2*Cout, R)
        y = bn(y, gm_ref[...], bm_ref[...])

        # residual add + final ReLU; lane-dense (Cout, R) store.
        o_ref[...] = jnp.maximum(y[:cout, :] + y[cout:, :], 0.0)

    return kernel


def _bottleneck_call(x2d, w1, g1, b1, w2, g2, b2, m2, wm, gm, bm, *, H, W):
    cout = wm.shape[0] // 2
    R = x2d.shape[1]
    args = (x2d, w1, g1, b1, w2, g2, b2, m2, wm, gm, bm)
    return pl.pallas_call(
        _make_kernel(H, W),
        out_shape=jax.ShapeDtypeStruct((cout, R), jnp.float32),
        # No grid: whole problem (~0.2 MiB) lives in VMEM, no pipelining overhead.
        in_specs=[pl.BlockSpec(memory_space=pltpu.MemorySpace.VMEM) for _ in args],
        out_specs=pl.BlockSpec(memory_space=pltpu.MemorySpace.VMEM),
    )(*args)


# ------------------------------ JAX glue ------------------------------------ #

def _conv3x3_masks(n, h, w):
    """(9, N*H*W) 0/1 masks: tap (dy,dx) valid iff (h+dy, w+dx) inside the image."""
    r = np.arange(n * h * w)
    hh = (r // w) % h
    ww = r % w
    m = np.zeros((9, n * h * w), np.float32)
    for k in range(9):
        dy, dx = k // 3 - 1, k % 3 - 1
        m[k] = ((hh + dy >= 0) & (hh + dy < h) & (ww + dx >= 0) & (ww + dx < w))
    return jnp.asarray(m)


def bottleneck_forward(x_nchw, p):
    n, cin, h, w = x_nchw.shape
    cs = p["w1"].shape[0]
    cout = p["w3"].shape[0]
    r = n * h * w

    # Channels-first slab: channels on sublanes, rows (N*H*W) lane-dense.
    # TODO(synk): if the consumer accepts this layout, both transposes could be skipped.
    x2d = jnp.transpose(x_nchw, (1, 0, 2, 3)).reshape(cin, r)

    # Repack PyTorch OIHW weights for the (C_out, C_in) @ (C_in, R) layout.
    w1 = p["w1"][:, :, 0, 0]                                           # (Cs, Cin)
    w2 = jnp.transpose(p["w2"], (2, 3, 0, 1)).reshape(9, cs, cs)       # tap-major
    w3 = p["w3"][:, :, 0, 0]                                           # (Cout, Cs)
    wp = p["wp"][:, :, 0, 0]                                           # (Cout, Cin)

    # Block-diagonal merged conv3 + projection weight acting on [x ; f2].
    wm = jnp.zeros((2 * cout, cin + cs), jnp.float32)
    wm = wm.at[:cout, cin:].set(w3)     # rows 0..Cout-1    -> conv3(f2)
    wm = wm.at[cout:, :cin].set(wp)     # rows Cout..2Cout-1 -> projection(x)

    g1, b1 = p["g1"].reshape(cs, 1), p["b1"].reshape(cs, 1)
    g2, b2 = p["g2"].reshape(cs, 1), p["b2"].reshape(cs, 1)
    gm = jnp.concatenate([p["g3"], p["gp"]]).reshape(2 * cout, 1)
    bm = jnp.concatenate([p["b3"], p["bp"]]).reshape(2 * cout, 1)

    m2 = _conv3x3_masks(n, h, w)

    out2d = _bottleneck_call(x2d, w1, g1, b1, w2, g2, b2, m2, wm, gm, bm, H=h, W=w)
    return jnp.transpose(out2d.reshape(cout, n, h, w), (1, 0, 2, 3))    # back to NCHW


def init_params(key, cin, cout, squeeze_ratio=4):
    """Deterministic synthetic parameters in PyTorch layouts (OIHW conv weights)."""
    cs = cin // squeeze_ratio
    ks = jax.random.split(key, 12)

    def wconv(k, shape, fan_in):
        return (jax.random.normal(k, shape, jnp.float32) / np.sqrt(fan_in)).astype(jnp.float32)

    def bn(kg, kb, c):
        g = 1.0 + 0.1 * jax.random.normal(kg, (c,), jnp.float32)
        b = 0.1 * jax.random.normal(kb, (c,), jnp.float32)
        return g, b

    g1, b1 = bn(ks[1], ks[2], cs)
    g2, b2 = bn(ks[4], ks[5], cs)
    g3, b3 = bn(ks[7], ks[8], cout)
    gp, bp = bn(ks[10], ks[11], cout)
    return dict(
        w1=wconv(ks[0], (cs, cin, 1, 1), cin), g1=g1, b1=b1,
        w2=wconv(ks[3], (cs, cs, 3, 3), cs * 9), g2=g2, b2=b2,
        w3=wconv(ks[6], (cout, cs, 1, 1), cs), g3=g3, b3=b3,
        wp=wconv(ks[9], (cout, cin, 1, 1), cin), gp=gp, bp=bp,
    )


# --------------------------- pure-JAX reference ------------------------------ #

def reference_forward(x, p):
    def conv_bn(z, wt, g, b, padding=0):
        y = lax.conv_general_dilated(z, wt, (1, 1), [(padding, padding)] * 2,
                                     dimension_numbers=("NCHW", "OIHW", "NCHW"))
        mean = jnp.mean(y, axis=(0, 2, 3), keepdims=True)
        var = jnp.mean((y - mean) ** 2, axis=(0, 2, 3), keepdims=True)
        return (y - mean) * lax.rsqrt(var + EPS) * g.reshape(1, -1, 1, 1) + b.reshape(1, -1, 1, 1)

    f = jax.nn.relu(conv_bn(x, p["w1"], p["g1"], p["b1"]))
    f = jax.nn.relu(conv_bn(f, p["w2"], p["g2"], p["b2"], padding=1))
    f = conv_bn(f, p["w3"], p["g3"], p["b3"])
    ident = conv_bn(x, p["wp"], p["gp"], p["bp"])
    return jax.nn.relu(f + ident)


# --------------------------------- main -------------------------------------- #

if __name__ == "__main__":
    key = jax.random.PRNGKey(0)
    kx, kp = jax.random.split(key)

    N, CIN, COUT, H, W = 2, 16, 32, 16, 16          # N*H*W = 512 rows (lane-dense)
    x = jax.random.normal(kx, (N, CIN, H, W), jnp.float32)   # NCHW, like PyTorch
    params = init_params(kp, CIN, COUT, squeeze_ratio=4)

    out = jax.block_until_ready(bottleneck_forward(x, params))
    ref = jax.block_until_ready(reference_forward(x, params))

    assert out.shape == (N, COUT, H, W), out.shape
    np.testing.assert_allclose(np.asarray(out), np.asarray(ref), rtol=5e-3, atol=5e-3)

    print("KERNEL_OK")
</pallas_src>

<mosaic_0001>
module attributes {stable_mosaic.version = 11 : i64} {
  func.func @kernel(%arg0: memref<16x512xf32, #tpu.memory_space<vmem>>, %arg1: memref<4x16xf32, #tpu.memory_space<vmem>>, %arg2: memref<4x1xf32, #tpu.memory_space<vmem>>, %arg3: memref<4x1xf32, #tpu.memory_space<vmem>>, %arg4: memref<9x4x4xf32, #tpu.memory_space<vmem>>, %arg5: memref<4x1xf32, #tpu.memory_space<vmem>>, %arg6: memref<4x1xf32, #tpu.memory_space<vmem>>, %arg7: memref<9x512xf32, #tpu.memory_space<vmem>>, %arg8: memref<64x20xf32, #tpu.memory_space<vmem>>, %arg9: memref<64x1xf32, #tpu.memory_space<vmem>>, %arg10: memref<64x1xf32, #tpu.memory_space<vmem>>, %arg11: memref<32x512xf32, #tpu.memory_space<vmem>>) attributes {dimension_semantics = [], scalar_prefetch = 0 : i64, scratch_operands = 0 : i64, tpu.core_type = #tpu.core_type<tc>} {
    %c0 = arith.constant 0 : index
    %c0_0 = arith.constant 0 : index
    %0 = vector.load %arg0[%c0, %c0_0] : memref<16x512xf32, #tpu.memory_space<vmem>>, vector<16x512xf32>
    %c0_1 = arith.constant 0 : index
    %c0_2 = arith.constant 0 : index
    %1 = vector.load %arg1[%c0_1, %c0_2] : memref<4x16xf32, #tpu.memory_space<vmem>>, vector<4x16xf32>
    %cst = arith.constant dense<0.000000e+00> : vector<4x512xf32>
    %2 = tpu.matmul %1, %0, %cst {dimension_numbers = #tpu.dot_dimension_numbers<[1], [0], [0], [1], [0, 0, 1, 1], [], []>} : vector<4x16xf32>, vector<16x512xf32>, vector<4x512xf32> -> vector<4x512xf32>
    %c0_3 = arith.constant 0 : index
    %c0_4 = arith.constant 0 : index
    %3 = vector.load %arg2[%c0_3, %c0_4] : memref<4x1xf32, #tpu.memory_space<vmem>>, vector<4x1xf32>
    %c0_5 = arith.constant 0 : index
    %c0_6 = arith.constant 0 : index
    %4 = vector.load %arg3[%c0_5, %c0_6] : memref<4x1xf32, #tpu.memory_space<vmem>>, vector<4x1xf32>
    %cst_7 = arith.constant dense<0.000000e+00> : vector<4xf32>
    %5 = vector.multi_reduction <add>, %2, %cst_7 [1] : vector<4x512xf32> to vector<4xf32>
    %6 = vector.shape_cast %5 : vector<4xf32> to vector<4x1xf32>
    %7 = arith.mulf %2, %2 : vector<4x512xf32>
    %cst_8 = arith.constant dense<0.000000e+00> : vector<4xf32>
    %8 = vector.multi_reduction <add>, %7, %cst_8 [1] : vector<4x512xf32> to vector<4xf32>
    %9 = vector.shape_cast %8 : vector<4xf32> to vector<4x1xf32>
    %cst_9 = arith.constant 0.001953125 : f32
    %10 = vector.broadcast %cst_9 : f32 to vector<4x1xf32>
    %11 = arith.mulf %6, %10 : vector<4x1xf32>
    %cst_10 = arith.constant 0.001953125 : f32
    %12 = vector.broadcast %cst_10 : f32 to vector<4x1xf32>
    %13 = arith.mulf %9, %12 : vector<4x1xf32>
    %14 = arith.mulf %11, %11 : vector<4x1xf32>
    %15 = arith.subf %13, %14 : vector<4x1xf32>
    %16 = vector.broadcast %11 : vector<4x1xf32> to vector<4x512xf32>
    %17 = arith.subf %2, %16 : vector<4x512xf32>
    %cst_11 = arith.constant 9.99999974E-6 : f32
    %18 = vector.broadcast %cst_11 : f32 to vector<4x1xf32>
    %19 = arith.addf %15, %18 : vector<4x1xf32>
    %20 = math.rsqrt %19 : vector<4x1xf32>
    %21 = vector.broadcast %20 : vector<4x1xf32> to vector<4x512xf32>
    %22 = arith.mulf %17, %21 : vector<4x512xf32>
    %23 = vector.broadcast %3 : vector<4x1xf32> to vector<4x512xf32>
    %24 = arith.mulf %22, %23 : vector<4x512xf32>
    %25 = vector.broadcast %4 : vector<4x1xf32> to vector<4x512xf32>
    %26 = arith.addf %24, %25 : vector<4x512xf32>
    %cst_12 = arith.constant 0.000000e+00 : f32
    %27 = vector.broadcast %cst_12 : f32 to vector<4x512xf32>
    %28 = arith.maximumf %26, %27 : vector<4x512xf32>
    %c0_13 = arith.constant 0 : index
    %c0_14 = arith.constant 0 : index
    %29 = vector.load %arg7[%c0_13, %c0_14] : memref<9x512xf32, #tpu.memory_space<vmem>>, vector<9x512xf32>
    %c0_15 = arith.constant 0 : index
    %c0_16 = arith.constant 0 : index
    %c0_17 = arith.constant 0 : index
    %30 = vector.load %arg4[%c0_15, %c0_16, %c0_17] : memref<9x4x4xf32, #tpu.memory_space<vmem>>, vector<9x4x4xf32>
    %cst_18 = arith.constant 0.000000e+00 : f32
    %31 = vector.broadcast %cst_18 : f32 to vector<4x512xf32>
    %c17_i32 = arith.constant 17 : i32
    %32 = tpu.dynamic_rotate %28 by %c17_i32 dim 1 : vector<4x512xf32>, i32 -> vector<4x512xf32>
    %33 = vector.extract_strided_slice %29 {offsets = [0, 0], sizes = [1, 512], strides = [1, 1]} : vector<9x512xf32> to vector<1x512xf32>
    %34 = vector.broadcast %33 : vector<1x512xf32> to vector<4x512xf32>
    %35 = arith.mulf %32, %34 : vector<4x512xf32>
    %36 = vector.extract_strided_slice %30 {offsets = [0, 0, 0], sizes = [1, 4, 4], strides = [1, 1, 1]} : vector<9x4x4xf32> to vector<1x4x4xf32>
    %37 = vector.shape_cast %36 : vector<1x4x4xf32> to vector<4x4xf32>
    %cst_19 = arith.constant dense<0.000000e+00> : vector<4x512xf32>
    %38 = tpu.matmul %37, %35, %cst_19 {dimension_numbers = #tpu.dot_dimension_numbers<[1], [0], [0], [1], [0, 0, 1, 1], [], []>} : vector<4x4xf32>, vector<4x512xf32>, vector<4x512xf32> -> vector<4x512xf32>
    %39 = arith.addf %31, %38 : vector<4x512xf32>
    %c16_i32 = arith.constant 16 : i32
    %40 = tpu.dynamic_rotate %28 by %c16_i32 dim 1 : vector<4x512xf32>, i32 -> vector<4x512xf32>
    %41 = vector.extract_strided_slice %29 {offsets = [1, 0], sizes = [1, 512], strides = [1, 1]} : vector<9x512xf32> to vector<1x512xf32>
    %42 = vector.broadcast %41 : vector<1x512xf32> to vector<4x512xf32>
    %43 = arith.mulf %40, %42 : vector<4x512xf32>
    %44 = vector.extract_strided_slice %30 {offsets = [1, 0, 0], sizes = [1, 4, 4], strides = [1, 1, 1]} : vector<9x4x4xf32> to vector<1x4x4xf32>
    %45 = vector.shape_cast %44 : vector<1x4x4xf32> to vector<4x4xf32>
    %cst_20 = arith.constant dense<0.000000e+00> : vector<4x512xf32>
    %46 = tpu.matmul %45, %43, %cst_20 {dimension_numbers = #tpu.dot_dimension_numbers<[1], [0], [0], [1], [0, 0, 1, 1], [], []>} : vector<4x4xf32>, vector<4x512xf32>, vector<4x512xf32> -> vector<4x512xf32>
    %47 = arith.addf %39, %46 : vector<4x512xf32>
    %c15_i32 = arith.constant 15 : i32
    %48 = tpu.dynamic_rotate %28 by %c15_i32 dim 1 : vector<4x512xf32>, i32 -> vector<4x512xf32>
    %49 = vector.extract_strided_slice %29 {offsets = [2, 0], sizes = [1, 512], strides = [1, 1]} : vector<9x512xf32> to vector<1x512xf32>
    %50 = vector.broadcast %49 : vector<1x512xf32> to vector<4x512xf32>
    %51 = arith.mulf %48, %50 : vector<4x512xf32>
    %52 = vector.extract_strided_slice %30 {offsets = [2, 0, 0], sizes = [1, 4, 4], strides = [1, 1, 1]} : vector<9x4x4xf32> to vector<1x4x4xf32>
    %53 = vector.shape_cast %52 : vector<1x4x4xf32> to vector<4x4xf32>
    %cst_21 = arith.constant dense<0.000000e+00> : vector<4x512xf32>
    %54 = tpu.matmul %53, %51, %cst_21 {dimension_numbers = #tpu.dot_dimension_numbers<[1], [0], [0], [1], [0, 0, 1, 1], [], []>} : vector<4x4xf32>, vector<4x512xf32>, vector<4x512xf32> -> vector<4x512xf32>
    %55 = arith.addf %47, %54 : vector<4x512xf32>
    %c1_i32 = arith.constant 1 : i32
    %56 = tpu.dynamic_rotate %28 by %c1_i32 dim 1 : vector<4x512xf32>, i32 -> vector<4x512xf32>
    %57 = vector.extract_strided_slice %29 {offsets = [3, 0], sizes = [1, 512], strides = [1, 1]} : vector<9x512xf32> to vector<1x512xf32>
    %58 = vector.broadcast %57 : vector<1x512xf32> to vector<4x512xf32>
    %59 = arith.mulf %56, %58 : vector<4x512xf32>
    %60 = vector.extract_strided_slice %30 {offsets = [3, 0, 0], sizes = [1, 4, 4], strides = [1, 1, 1]} : vector<9x4x4xf32> to vector<1x4x4xf32>
    %61 = vector.shape_cast %60 : vector<1x4x4xf32> to vector<4x4xf32>
    %cst_22 = arith.constant dense<0.000000e+00> : vector<4x512xf32>
    %62 = tpu.matmul %61, %59, %cst_22 {dimension_numbers = #tpu.dot_dimension_numbers<[1], [0], [0], [1], [0, 0, 1, 1], [], []>} : vector<4x4xf32>, vector<4x512xf32>, vector<4x512xf32> -> vector<4x512xf32>
    %63 = arith.addf %55, %62 : vector<4x512xf32>
    %64 = vector.extract_strided_slice %29 {offsets = [4, 0], sizes = [1, 512], strides = [1, 1]} : vector<9x512xf32> to vector<1x512xf32>
    %65 = vector.broadcast %64 : vector<1x512xf32> to vector<4x512xf32>
    %66 = arith.mulf %28, %65 : vector<4x512xf32>
    %67 = vector.extract_strided_slice %30 {offsets = [4, 0, 0], sizes = [1, 4, 4], strides = [1, 1, 1]} : vector<9x4x4xf32> to vector<1x4x4xf32>
    %68 = vector.shape_cast %67 : vector<1x4x4xf32> to vector<4x4xf32>
    %cst_23 = arith.constant dense<0.000000e+00> : vector<4x512xf32>
    %69 = tpu.matmul %68, %66, %cst_23 {dimension_numbers = #tpu.dot_dimension_numbers<[1], [0], [0], [1], [0, 0, 1, 1], [], []>} : vector<4x4xf32>, vector<4x512xf32>, vector<4x512xf32> -> vector<4x512xf32>
    %70 = arith.addf %63, %69 : vector<4x512xf32>
    %c511_i32 = arith.constant 511 : i32
    %71 = tpu.dynamic_rotate %28 by %c511_i32 dim 1 : vector<4x512xf32>, i32 -> vector<4x512xf32>
    %72 = vector.extract_strided_slice %29 {offsets = [5, 0], sizes = [1, 512], strides = [1, 1]} : vector<9x512xf32> to vector<1x512xf32>
    %73 = vector.broadcast %72 : vector<1x512xf32> to vector<4x512xf32>
    %74 = arith.mulf %71, %73 : vector<4x512xf32>
    %75 = vector.extract_strided_slice %30 {offsets = [5, 0, 0], sizes = [1, 4, 4], strides = [1, 1, 1]} : vector<9x4x4xf32> to vector<1x4x4xf32>
    %76 = vector.shape_cast %75 : vector<1x4x4xf32> to vector<4x4xf32>
    %cst_24 = arith.constant dense<0.000000e+00> : vector<4x512xf32>
    %77 = tpu.matmul %76, %74, %cst_24 {dimension_numbers = #tpu.dot_dimension_numbers<[1], [0], [0], [1], [0, 0, 1, 1], [], []>} : vector<4x4xf32>, vector<4x512xf32>, vector<4x512xf32> -> vector<4x512xf32>
    %78 = arith.addf %70, %77 : vector<4x512xf32>
    %c497_i32 = arith.constant 497 : i32
    %79 = tpu.dynamic_rotate %28 by %c497_i32 dim 1 : vector<4x512xf32>, i32 -> vector<4x512xf32>
    %80 = vector.extract_strided_slice %29 {offsets = [6, 0], sizes = [1, 512], strides = [1, 1]} : vector<9x512xf32> to vector<1x512xf32>
    %81 = vector.broadcast %80 : vector<1x512xf32> to vector<4x512xf32>
    %82 = arith.mulf %79, %81 : vector<4x512xf32>
    %83 = vector.extract_strided_slice %30 {offsets = [6, 0, 0], sizes = [1, 4, 4], strides = [1, 1, 1]} : vector<9x4x4xf32> to vector<1x4x4xf32>
    %84 = vector.shape_cast %83 : vector<1x4x4xf32> to vector<4x4xf32>
    %cst_25 = arith.constant dense<0.000000e+00> : vector<4x512xf32>
    %85 = tpu.matmul %84, %82, %cst_25 {dimension_numbers = #tpu.dot_dimension_numbers<[1], [0], [0], [1], [0, 0, 1, 1], [], []>} : vector<4x4xf32>, vector<4x512xf32>, vector<4x512xf32> -> vector<4x512xf32>
    %86 = arith.addf %78, %85 : vector<4x512xf32>
    %c496_i32 = arith.constant 496 : i32
    %87 = tpu.dynamic_rotate %28 by %c496_i32 dim 1 : vector<4x512xf32>, i32 -> vector<4x512xf32>
    %88 = vector.extract_strided_slice %29 {offsets = [7, 0], sizes = [1, 512], strides = [1, 1]} : vector<9x512xf32> to vector<1x512xf32>
    %89 = vector.broadcast %88 : vector<1x512xf32> to vector<4x512xf32>
    %90 = arith.mulf %87, %89 : vector<4x512xf32>
    %91 = vector.extract_strided_slice %30 {offsets = [7, 0, 0], sizes = [1, 4, 4], strides = [1, 1, 1]} : vector<9x4x4xf32> to vector<1x4x4xf32>
    %92 = vector.shape_cast %91 : vector<1x4x4xf32> to vector<4x4xf32>
    %cst_26 = arith.constant dense<0.000000e+00> : vector<4x512xf32>
    %93 = tpu.matmul %92, %90, %cst_26 {dimension_numbers = #tpu.dot_dimension_numbers<[1], [0], [0], [1], [0, 0, 1, 1], [], []>} : vector<4x4xf32>, vector<4x512xf32>, vector<4x512xf32> -> vector<4x512xf32>
    %94 = arith.addf %86, %93 : vector<4x512xf32>
    %c495_i32 = arith.constant 495 : i32
    %95 = tpu.dynamic_rotate %28 by %c495_i32 dim 1 : vector<4x512xf32>, i32 -> vector<4x512xf32>
    %96 = vector.extract_strided_slice %29 {offsets = [8, 0], sizes = [1, 512], strides = [1, 1]} : vector<9x512xf32> to vector<1x512xf32>
    %97 = vector.broadcast %96 : vector<1x512xf32> to vector<4x512xf32>
    %98 = arith.mulf %95, %97 : vector<4x512xf32>
    %99 = vector.extract_strided_slice %30 {offsets = [8, 0, 0], sizes = [1, 4, 4], strides = [1, 1, 1]} : vector<9x4x4xf32> to vector<1x4x4xf32>
    %100 = vector.shape_cast %99 : vector<1x4x4xf32> to vector<4x4xf32>
    %cst_27 = arith.constant dense<0.000000e+00> : vector<4x512xf32>
    %101 = tpu.matmul %100, %98, %cst_27 {dimension_numbers = #tpu.dot_dimension_numbers<[1], [0], [0], [1], [0, 0, 1, 1], [], []>} : vector<4x4xf32>, vector<4x512xf32>, vector<4x512xf32> -> vector<4x512xf32>
    %102 = arith.addf %94, %101 : vector<4x512xf32>
    %c0_28 = arith.constant 0 : index
    %c0_29 = arith.constant 0 : index
    %103 = vector.load %arg5[%c0_28, %c0_29] : memref<4x1xf32, #tpu.memory_space<vmem>>, vector<4x1xf32>
    %c0_30 = arith.constant 0 : index
    %c0_31 = arith.constant 0 : index
    %104 = vector.load %arg6[%c0_30, %c0_31] : memref<4x1xf32, #tpu.memory_space<vmem>>, vector<4x1xf32>
    %cst_32 = arith.constant dense<0.000000e+00> : vector<4xf32>
    %105 = vector.multi_reduction <add>, %102, %cst_32 [1] : vector<4x512xf32> to vector<4xf32>
    %106 = vector.shape_cast %105 : vector<4xf32> to vector<4x1xf32>
    %107 = arith.mulf %102, %102 : vector<4x512xf32>
    %cst_33 = arith.constant dense<0.000000e+00> : vector<4xf32>
    %108 = vector.multi_reduction <add>, %107, %cst_33 [1] : vector<4x512xf32> to vector<4xf32>
    %109 = vector.shape_cast %108 : vector<4xf32> to vector<4x1xf32>
    %cst_34 = arith.constant 0.001953125 : f32
    %110 = vector.broadcast %cst_34 : f32 to vector<4x1xf32>
    %111 = arith.mulf %106, %110 : vector<4x1xf32>
    %cst_35 = arith.constant 0.001953125 : f32
    %112 = vector.broadcast %cst_35 : f32 to vector<4x1xf32>
    %113 = arith.mulf %109, %112 : vector<4x1xf32>
    %114 = arith.mulf %111, %111 : vector<4x1xf32>
    %115 = arith.subf %113, %114 : vector<4x1xf32>
    %116 = vector.broadcast %111 : vector<4x1xf32> to vector<4x512xf32>
    %117 = arith.subf %102, %116 : vector<4x512xf32>
    %cst_36 = arith.constant 9.99999974E-6 : f32
    %118 = vector.broadcast %cst_36 : f32 to vector<4x1xf32>
    %119 = arith.addf %115, %118 : vector<4x1xf32>
    %120 = math.rsqrt %119 : vector<4x1xf32>
    %121 = vector.broadcast %120 : vector<4x1xf32> to vector<4x512xf32>
    %122 = arith.mulf %117, %121 : vector<4x512xf32>
    %123 = vector.broadcast %103 : vector<4x1xf32> to vector<4x512xf32>
    %124 = arith.mulf %122, %123 : vector<4x512xf32>
    %125 = vector.broadcast %104 : vector<4x1xf32> to vector<4x512xf32>
    %126 = arith.addf %124, %125 : vector<4x512xf32>
    %cst_37 = arith.constant 0.000000e+00 : f32
    %127 = vector.broadcast %cst_37 : f32 to vector<4x512xf32>
    %128 = arith.maximumf %126, %127 : vector<4x512xf32>
    %129 = tpu.concatenate %0, %128 in 0 : vector<16x512xf32>, vector<4x512xf32> -> vector<20x512xf32>
    %c0_38 = arith.constant 0 : index
    %c0_39 = arith.constant 0 : index
    %130 = vector.load %arg8[%c0_38, %c0_39] : memref<64x20xf32, #tpu.memory_space<vmem>>, vector<64x20xf32>
    %cst_40 = arith.constant dense<0.000000e+00> : vector<64x512xf32>
    %131 = tpu.matmul %130, %129, %cst_40 {dimension_numbers = #tpu.dot_dimension_numbers<[1], [0], [0], [1], [0, 0, 1, 1], [], []>} : vector<64x20xf32>, vector<20x512xf32>, vector<64x512xf32> -> vector<64x512xf32>
    %c0_41 = arith.constant 0 : index
    %c0_42 = arith.constant 0 : index
    %132 = vector.load %arg9[%c0_41, %c0_42] : memref<64x1xf32, #tpu.memory_space<vmem>>, vector<64x1xf32>
    %c0_43 = arith.constant 0 : index
    %c0_44 = arith.constant 0 : index
    %133 = vector.load %arg10[%c0_43, %c0_44] : memref<64x1xf32, #tpu.memory_space<vmem>>, vector<64x1xf32>
    %cst_45 = arith.constant dense<0.000000e+00> : vector<64xf32>
    %134 = vector.multi_reduction <add>, %131, %cst_45 [1] : vector<64x512xf32> to vector<64xf32>
    %135 = vector.shape_cast %134 : vector<64xf32> to vector<64x1xf32>
    %136 = arith.mulf %131, %131 : vector<64x512xf32>
    %cst_46 = arith.constant dense<0.000000e+00> : vector<64xf32>
    %137 = vector.multi_reduction <add>, %136, %cst_46 [1] : vector<64x512xf32> to vector<64xf32>
    %138 = vector.shape_cast %137 : vector<64xf32> to vector<64x1xf32>
    %cst_47 = arith.constant 0.001953125 : f32
    %139 = vector.broadcast %cst_47 : f32 to vector<64x1xf32>
    %140 = arith.mulf %135, %139 : vector<64x1xf32>
    %cst_48 = arith.constant 0.001953125 : f32
    %141 = vector.broadcast %cst_48 : f32 to vector<64x1xf32>
    %142 = arith.mulf %138, %141 : vector<64x1xf32>
    %143 = arith.mulf %140, %140 : vector<64x1xf32>
    %144 = arith.subf %142, %143 : vector<64x1xf32>
    %145 = vector.broadcast %140 : vector<64x1xf32> to vector<64x512xf32>
    %146 = arith.subf %131, %145 : vector<64x512xf32>
    %cst_49 = arith.constant 9.99999974E-6 : f32
    %147 = vector.broadcast %cst_49 : f32 to vector<64x1xf32>
    %148 = arith.addf %144, %147 : vector<64x1xf32>
    %149 = math.rsqrt %148 : vector<64x1xf32>
    %150 = vector.broadcast %149 : vector<64x1xf32> to vector<64x512xf32>
    %151 = arith.mulf %146, %150 : vector<64x512xf32>
    %152 = vector.broadcast %132 : vector<64x1xf32> to vector<64x512xf32>
    %153 = arith.mulf %151, %152 : vector<64x512xf32>
    %154 = vector.broadcast %133 : vector<64x1xf32> to vector<64x512xf32>
    %155 = arith.addf %153, %154 : vector<64x512xf32>
    %156 = vector.extract_strided_slice %155 {offsets = [0, 0], sizes = [32, 512], strides = [1, 1]} : vector<64x512xf32> to vector<32x512xf32>
    %157 = vector.extract_strided_slice %155 {offsets = [32, 0], sizes = [32, 512], strides = [1, 1]} : vector<64x512xf32> to vector<32x512xf32>
    %158 = arith.addf %156, %157 : vector<32x512xf32>
    %cst_50 = arith.constant 0.000000e+00 : f32
    %159 = vector.broadcast %cst_50 : f32 to vector<32x512xf32>
    %160 = arith.maximumf %158, %159 : vector<32x512xf32>
    %c0_51 = arith.constant 0 : index
    %c0_52 = arith.constant 0 : index
    %161 = vector.load %arg11[%c0_51, %c0_52] : memref<32x512xf32, #tpu.memory_space<vmem>>, vector<32x512xf32>
    tpu.vector_store %arg11[%c0_51, %c0_52], %160 {strides = array<i32>} : memref<32x512xf32, #tpu.memory_space<vmem>>, vector<32x512xf32>,
    return
  }
}

</mosaic_0001>

<bundles_post_ra>
// kernel: tpu_custom_call.1
= control target key start
LH: loop header
LB: loop body
LE: loop exit
PB: predicated region body
PF: predicated region fallthrough
CT: control target
= control target key end

     0   :  { %vm48_vm0 = vcmask 130048   ;;  %s3323_s0 = inlined_call_operand.vmem [shape: f32[16,512], index: 0, kind: input, shape index: {}]   ;;  %s3324_s1 = inlined_call_operand.vmem [shape: f32[4,16], index: 1, kind: input, shape index: {}]   ;;  %s3325_s2 = inlined_call_operand.vmem [shape: f32[4,1], index: 2, kind: input, shape index: {}]   ;;  %s3326_s3 = inlined_call_operand.vmem [shape: f32[4,1], index: 3, kind: input, shape index: {}]   ;;  %s3327_s4 = inlined_call_operand.vmem [shape: f32[9,4,4], index: 4, kind: input, shape index: {}]   ;;  %s3328_s5 = inlined_call_operand.vmem [shape: f32[4,1], index: 5, kind: input, shape index: {}]   ;;  %s3329_s6 = inlined_call_operand.vmem [shape: f32[4,1], index: 6, kind: input, shape index: {}]   ;;  %s3330_s7 = inlined_call_operand.vmem [shape: f32[9,512], index: 7, kind: input, shape index: {}]   ;;  %s3331_s8 = inlined_call_operand.vmem [shape: f32[64,20], index: 8, kind: input, shape index: {}]   ;;  %s3332_s9 = inlined_call_operand.vmem [shape: f32[64,1], index: 9, kind: input, shape index: {}]   ;;  %s3333_s10 = inlined_call_operand.vmem [shape: f32[64,1], index: 10, kind: input, shape index: {}]   ;;  %s3334_s11 = inlined_call_operand.hbm [shape: f32[32,512], index: 11, kind: output, shape index: {}]  }
   0x1   :  { %v45_v0 = vld [vmem:[%s3323_s0 + $0x30] sm:$0xff]  ;;  %v46_v2 = vld [vmem:[%s3323_s0 + $0x38] sm:$0xff]  ;;  %v47_v3 = vld [vmem:[%s3324_s1] sm:$0xf] }
   0x2   :  { %v41_v1 = vld [vmem:[%s3323_s0 + $0x10] sm:$0xff]  ;;  %106 = vmatpush.msra.mxu2 %v45_v0  ;;  %126 = vmatpush.msra.mxu3 %v46_v2  ;;  %v2351_v4 = vld [vmem:[%s3323_s0 + $0x20] sm:$0xff]  ;;  %v2356_v5 = vld [vmem:[%s3323_s0 + $0x28] sm:$0xff] }
   0x3   :  { %66 = vmatpush.msra.mxu0 %v2351_v4  ;;  %86 = vmatpush.msra.mxu1 %v2356_v5  ;;  %v42_v6 = vld [vmem:[%s3323_s0 + $0x18] sm:$0xff]  ;;  %v39_v7 = vld [vmem:[%s3323_s0] sm:$0xff]  ;;  %v40_v8 = vld [vmem:[%s3323_s0 + $0x8] sm:$0xff] }
   0x4   :  { %107 = vmatpush.msra.mxu2 %v41_v1  ;;  %127 = vmatpush.msra.mxu3 %v42_v6 }
   0x5   :  { %2083 = vmatmul.msk.f32.vlgmr.msra.gmra.mxu2 %vm48_vm0, %v47_v3  ;;  %2084 = vmatmul.msk.f32.vlgmr.msra.gmra.mxu3 %vm48_vm0, %v47_v3 }
   0x6   :  { %16 = vsyncpa [#allocation3], 0  ;;  %67 = vmatpush.msra.mxu0 %v39_v7  ;;  %87 = vmatpush.msra.mxu1 %v40_v8  ;;  %v132_v9 = vld [vmem:[%s3325_s2] sm:$0xf]  ;;  %v2264_v10 = vmov 0   ;;  %vm134_vm1 = vcmask 1043456  }
   0x7   :  { %2081 = vmatmul.msk.f32.vlgmr.msra.gmra.mxu0 %vm48_vm0, %v47_v3  ;;  %2082 = vmatmul.msk.f32.vlgmr.msra.gmra.mxu1 %vm48_vm0, %v47_v3  ;;  %v133_v11 = vld [vmem:[%s3326_s3] sm:$0xf]  ;;  %s2265_s2 = smov 16   ;;  %s2266_s3 = smov 15   ;;  %vm263_vm6 = vcmask 31744  }
   0x8   :  { %2205 = vset.pattern.permute.xlu1 %v2264_v10  ;;  %2206 = vset.pattern.permute.xlu2 %v2264_v10  ;;  %s2267_s19 = smov 17   ;;  %s2268_s20 = smov 1   ;;  %v1281_v8 = vld [vmem:[%s3328_s5] sm:$0xf] }
   0x9   :  { %182 = vperm.xlu1 %2205, %v132_v9   ;;  %2207 = vset.pattern.permute.xlu0 %v2264_v10  ;;  %s2269_s21 = smov 127   ;;  %s2270_s22 = smov 113   ;;  %v227_v9 = vlaneseq }
   0xa   :  { %s2271_s23 = smov 112   ;;  %s2272_s24 = smov 111  }
  0x11   :  { %191 = vperm.xlu1 %2205, %v133_v11   ;;  %v2430_v11 = vand.u32 127, %v227_v9 }
  0x13   :  { %vm250_vm5 = vcmp.lt.s32.totalorder %v2430_v11, 16  ;;  %vm462_vm7 = vcmp.lt.s32.totalorder %v2430_v11, 15  ;;  %vm229_vm8 = vcmp.lt.s32.totalorder %v2430_v11, 17  ;;  %vm582_vm9 = vcmp.lt.s32.totalorder %v2430_v11, 1 }
  0x14   :  { %vm809_vm10 = vcmp.lt.s32.totalorder %v2430_v11, 127  ;;  %vm929_vm11 = vcmp.lt.s32.totalorder %v2430_v11, 113  ;;  %vm1049_vm12 = vcmp.lt.s32.totalorder %v2430_v11, 112  ;;  %vm1169_vm13 = vcmp.lt.s32.totalorder %v2430_v11, 111 }
  0x7b   :  { %v183_v45 = vpop.permute.xlu1 %182 }
  0x83   :  { %v192_v60 = vpop.permute.xlu1 %191 }
  0x84   :  { %v69_v12 = vpop.f32.mrf.mxu0  ;;  %v89_v13 = vpop.f32.mrf.mxu1 }
  0x85   :  { %v135_v14 = vsel %vm134_vm1, %v69_v12, 0.0  ;;  %v144_v15 = vmul.f32 %v69_v12, %v69_v12  ;;  %v136_v16 = vsel %vm134_vm1, %v89_v13, 0.0  ;;  %v145_v17 = vmul.f32 %v89_v13, %v89_v13 }
  0x86   :  { %v137_v18 = vadd.f32 %v136_v16, %v135_v14 }
  0x87   :  { %v148_v19 = vsel %vm134_vm1, %v144_v15, 0.0  ;;  %v149_v22 = vsel %vm134_vm1, %v145_v17, 0.0 }
  0x88   :  { %v109_v20 = vpop.f32.mrf.mxu2  ;;  %v129_v21 = vpop.f32.mrf.mxu3  ;;  %v150_v28 = vadd.f32 %v149_v22, %v148_v19  ;;  %v1560_v19 = vld [vmem:[%s3332_s9 + $0x8] sm:$0xff]  ;;  %v2458_v22 = vld [vmem:[%s3330_s7 + $0x18] sm:$0xff] }
  0x89   :  { %v146_v23 = vmul.f32 %v109_v20, %v109_v20  ;;  %v138_v24 = vsel %vm134_vm1, %v109_v20, 0.0  ;;  %v140_v25 = vsel %vm134_vm1, %v129_v21, 0.0  ;;  %v147_v29 = vmul.f32 %v129_v21, %v129_v21 }
  0x8a   :  { %v139_v26 = vadd.f32 %v138_v24, %v137_v18  ;;  %v211_v18 = vld [vmem:[%s3327_s4 + $0x4] sm:$0xf] }
  0x8b   :  { %v151_v30 = vsel %vm134_vm1, %v146_v23, 0.0  ;;  %v153_v32 = vsel %vm134_vm1, %v147_v29, 0.0  ;;  %v258_v23 = vperm.slane %v2458_v22, 1  ;;  %v2464_v24 = vld [vmem:[%s3330_s7] sm:$0xff] }
  0x8c   :  { %v141_v27 = vadd.f32 %v140_v25, %v139_v26  ;;  %v152_v31 = vadd.f32 %v151_v30, %v150_v28  ;;  %v2469_v25 = vld [vmem:[%s3330_s7 + $0x8] sm:$0xff]  ;;  %v255_v26 = vperm.slane %v2464_v24, 1  ;;  %v587_v9 = vperm.slane %v2464_v24, 3 }
  0x8e   :  { %142 = vadd.xlane.f32.xlu0 %v141_v27  ;;  %v154_v33 = vadd.f32 %v153_v32, %v152_v31  ;;  %v256_v27 = vperm.slane %v2469_v25, 1 }
  0x96   :  { %155 = vadd.xlane.f32.xlu0 %v154_v33 }
 0x101   :  { %v143_v34 = vpop.xlane.xlu0 %142 }
 0x102   :  { %v157_v35 = vmul.f32 0.001953125, %v143_v34 }
 0x104   :  { %v159_v37 = vmul.f32 %v157_v35, %v157_v35  ;;  %v161_v48 = vsub.f32 %v69_v12, %v157_v35  ;;  %v162_v49 = vsub.f32 %v89_v13, %v157_v35  ;;  %v164_v50 = vsub.f32 %v129_v21, %v157_v35  ;;  %v1282_v12 = vld [vmem:[%s3329_s6] sm:$0xf]  ;;  %v2438_v13 = vld [vmem:[%s3330_s7 + $0x10] sm:$0xff] }
 0x105   :  { %v163_v52 = vsub.f32 %v109_v20, %v157_v35  ;;  %v257_v14 = vperm.slane %v2438_v13, 1  ;;  %v1563_v21 = vld [vmem:[%s3332_s9 + $0x20] sm:$0xff] }
 0x109   :  { %v156_v36 = vpop.xlane.xlu0 %155 }
 0x10a   :  { %v158_v38 = vmul.f32 0.001953125, %v156_v36 }
 0x10c   :  { %v160_v39 = vsub.f32 %v158_v38, %v159_v37  ;;  %v1565_v37 = vld [vmem:[%s3332_s9 + $0x30] sm:$0xff]  ;;  %v469_v38 = vperm.slane %v2438_v13, 2 }
 0x10e   :  { %v165_v40 = vadd.f32 1e-05, %v160_v39  ;;  %v236_v39 = vperm.slane %v2438_v13, 0 }
 0x110   :  { %2212 = vrsqrt.f32 %v165_v40  ;;  %vm172_vm3 = vweird.f32 %v165_v40 }
 0x116   :  { %v2213_v41 = vpop.eup %2212 }
 0x117   :  { %v167_v42 = vmul.f32 %v2213_v41, %v165_v40  ;;  %vm173_vm2 = vweird.f32 %v2213_v41  ;;  %v237_v40 = vperm.slane %v2458_v22, 0 }
 0x118   :  { %vm174_vm4 = vmor %vm172_vm3, %vm173_vm2  ;;  %vm1358_vm2 = vcmask 162816  }
 0x119   :  { %v168_v43 = vmul.f32 %v2213_v41, %v167_v42 }
 0x11b   :  { %v169_v44 = vmul.f32 0.5, %v168_v43 }
 0x11d   :  { %v170_v46 = vsub.f32 1.5, %v169_v44 }
 0x11f   :  { %v171_v47 = vmul.f32 %v2213_v41, %v170_v46 }
 0x121   :  { %v175_v51 = vsel %vm174_vm4, %v2213_v41, %v171_v47 }
 0x122   :  { %v176_v53 = vmul.f32 %v175_v51, %v161_v48  ;;  %v177_v54 = vmul.f32 %v175_v51, %v162_v49  ;;  %v179_v55 = vmul.f32 %v175_v51, %v164_v50  ;;  %v178_v56 = vmul.f32 %v175_v51, %v163_v52  ;;  %v1567_v50 = vld [vmem:[%s3333_s10] sm:$0xff] }
 0x123   :  { %v210_v51 = vld [vmem:[%s3327_s4] sm:$0xf]  ;;  %v468_v52 = vperm.slane %v2469_v25, 2 }
 0x124   :  { %v185_v57 = vmul.f32 %v183_v45, %v176_v53  ;;  %v186_v58 = vmul.f32 %v183_v45, %v177_v54  ;;  %v188_v59 = vmul.f32 %v183_v45, %v179_v55  ;;  %v187_v0 = vmul.f32 %v183_v45, %v178_v56 }
 0x125   :  { %v234_v53 = vperm.slane %v2464_v24, 0  ;;  %v235_v54 = vperm.slane %v2469_v25, 0 }
 0x126   :  { %v194_v61 = vadd.f32 %v192_v60, %v185_v57  ;;  %v195_v62 = vadd.f32 %v192_v60, %v186_v58  ;;  %v197_v63 = vadd.f32 %v192_v60, %v188_v59  ;;  %v196_v6 = vadd.f32 %v192_v60, %v187_v0  ;;  %v1570_v0 = vld [vmem:[%s3333_s10 + $0x18] sm:$0xff] }
 0x128   :  { %v2387_v1 = vmax.f32 %v194_v61, 0.0  ;;  %v2389_v2 = vmax.f32 %v195_v62, 0.0  ;;  %v2391_v3 = vmax.f32 %v197_v63, 0.0  ;;  %v2396_v7 = vmax.f32 %v196_v6, 0.0  ;;  %v212_v6 = vld [vmem:[%s3327_s4 + $0x8] sm:$0xf] }
 0x12a   :  { %248 = vrot.lane.b32.xlu0 %v2391_v3, %s2265_s2  ;;  %244 = vrot.lane.b32.xlu2 %v2389_v2, %s2265_s2 }
 0x12b   :  { %242 = vrot.lane.b32.xlu1 %v2387_v1, %s2265_s2 }
 0x132   :  { %458 = vrot.lane.b32.xlu0 %v2396_v7, %s2266_s3  ;;  %246 = vrot.lane.b32.xlu2 %v2396_v7, %s2265_s2 }
 0x133   :  { %223 = vrot.lane.b32.xlu1 %v2396_v7, %s2267_s19 }
 0x13a   :  { %576 = vrot.lane.b32.xlu0 %v2389_v2, %s2268_s20  ;;  %221 = vrot.lane.b32.xlu2 %v2389_v2, %s2267_s19 }
 0x13b   :  { %219 = vrot.lane.b32.xlu1 %v2387_v1, %s2267_s19 }
 0x142   :  { %225 = vrot.lane.b32.xlu2 %v2391_v3, %s2267_s19  ;;  %574 = vrot.lane.b32.xlu0 %v2387_v1, %s2268_s20 }
 0x143   :  { %460 = vrot.lane.b32.xlu1 %v2391_v3, %s2266_s3 }
 0x14a   :  { %456 = vrot.lane.b32.xlu2 %v2389_v2, %s2266_s3  ;;  %801 = vrot.lane.b32.xlu0 %v2387_v1, %s2269_s21 }
 0x14b   :  { %578 = vrot.lane.b32.xlu1 %v2396_v7, %s2268_s20 }
 0x152   :  { %927 = vrot.lane.b32.xlu0 %v2391_v3, %s2270_s22  ;;  %454 = vrot.lane.b32.xlu2 %v2387_v1, %s2266_s3 }
 0x153   :  { %805 = vrot.lane.b32.xlu1 %v2396_v7, %s2269_s21 }
 0x15a   :  { %1045 = vrot.lane.b32.xlu0 %v2396_v7, %s2271_s23  ;;  %580 = vrot.lane.b32.xlu2 %v2391_v3, %s2268_s20 }
 0x15b   :  { %803 = vrot.lane.b32.xlu1 %v2389_v2, %s2269_s21 }
 0x162   :  { %1043 = vrot.lane.b32.xlu0 %v2389_v2, %s2271_s23  ;;  %807 = vrot.lane.b32.xlu2 %v2391_v3, %s2269_s21 }
 0x163   :  { %921 = vrot.lane.b32.xlu1 %v2387_v1, %s2270_s22 }
 0x16a   :  { %1161 = vrot.lane.b32.xlu0 %v2387_v1, %s2272_s24  ;;  %925 = vrot.lane.b32.xlu2 %v2396_v7, %s2270_s22 }
 0x16b   :  { %1047 = vrot.lane.b32.xlu1 %v2391_v3, %s2271_s23 }
 0x172   :  { %923 = vrot.lane.b32.xlu2 %v2389_v2, %s2270_s22  ;;  %s2069_s22 = sshll.u32 %s3334_s11, 4  ;;  %s2070_s22 = int_to_ptr.hbm [resolvable:$true] %s2069_s22 }
 0x173   :  { %1165 = vrot.lane.b32.xlu1 %v2396_v7, %s2272_s24 }
 0x17a   :  { %1041 = vrot.lane.b32.xlu2 %v2387_v1, %s2271_s23  ;;  %s2274_s23 = smov 512  }
 0x17b   :  { %1163 = vrot.lane.b32.xlu1 %v2389_v2, %s2272_s24 }
 0x182   :  { %1167 = vrot.lane.b32.xlu2 %v2391_v3, %s2272_s24  ;;  %s2275_s24 = smov 32  }
 0x183   :  { %1330 = vperm.xlu1 %2205, %v1281_v8   ;;  %v588_v8 = vperm.slane %v2469_v25, 3 }
 0x184   :  { %v245_v10 = vpop.permute.xlu2 %244 }
 0x18b   :  { %1339 = vperm.xlu1 %2205, %v1282_v12   ;;  %v470_v12 = vperm.slane %v2458_v22, 2 }
 0x18c   :  { %v247_v15 = vpop.permute.xlu2 %246 }
 0x18d   :  { %v252_v16 = vsel %vm250_vm5, %v245_v10, %v247_v15 }
 0x18e   :  { %v261_v17 = vmul.f32 %v257_v14, %v252_v16 }
 0x190   :  { %2089 = vmatpush.msk.msrb.mxu2 %vm134_vm1, %v261_v17 }
 0x191   :  { %2090 = vmatmul.msk.f32.vlgmr.msrb.gmra.mxu2 %vm263_vm6, %v211_v18 }
 0x193   :  { %1878 = vperm.xlu1 %2205, %v1560_v19   ;;  %v695_v19 = vperm.slane %v2469_v25, 4 }
 0x194   :  { %v222_v20 = vpop.permute.xlu2 %221 }
 0x19b   :  { %1893 = vperm.xlu1 %2205, %v1563_v21  }
 0x19c   :  { %v249_v28 = vpop.permute.xlu0 %248  ;;  %v226_v29 = vpop.permute.xlu2 %225 }
 0x19d   :  { %v251_v30 = vsel %vm250_vm5, %v247_v15, %v249_v28  ;;  %v243_v31 = vpop.permute.xlu1 %242 }
 0x19e   :  { %v262_v32 = vmul.f32 %v258_v23, %v251_v30  ;;  %v253_v33 = vsel %vm250_vm5, %v243_v31, %v245_v10  ;;  %v254_v34 = vsel %vm250_vm5, %v249_v28, %v243_v31  ;;  %v467_v10 = vperm.slane %v2464_v24, 2 }
 0x19f   :  { %v259_v35 = vmul.f32 %v255_v26, %v254_v34  ;;  %v260_v36 = vmul.f32 %v256_v27, %v253_v33  ;;  %v694_v26 = vperm.slane %v2464_v24, 4  ;;  %v699_v30 = vmul.f32 %v695_v19, %v2389_v2 }
 0x1a0   :  { %2091 = vmatpush.msk.msrb.mxu3 %vm134_vm1, %v262_v32  ;;  %v589_v32 = vperm.slane %v2438_v13, 3  ;;  %v590_v33 = vperm.slane %v2458_v22, 3 }
 0x1a1   :  { %2085 = vmatpush.msk.msrb.mxu0 %vm134_vm1, %v259_v35  ;;  %2087 = vmatpush.msk.msrb.mxu1 %vm134_vm1, %v260_v36  ;;  %v698_v31 = vmul.f32 %v694_v26, %v2387_v1 }
 0x1a2   :  { %2086 = vmatmul.msk.f32.vlgmr.msrb.gmra.mxu0 %vm263_vm6, %v211_v18  ;;  %2088 = vmatmul.msk.f32.vlgmr.msrb.gmra.mxu1 %vm263_vm6, %v211_v18 }
 0x1a3   :  { %1903 = vperm.xlu1 %2205, %v1565_v37   ;;  %2092 = vmatmul.msk.f32.vlgmr.msrb.gmra.mxu3 %vm263_vm6, %v211_v18  ;;  %v696_v37 = vperm.slane %v2438_v13, 4 }
 0x1a4   :  { %v459_v41 = vpop.permute.xlu0 %458  ;;  %v457_v42 = vpop.permute.xlu2 %456 }
 0x1a5   :  { %v464_v43 = vsel %vm462_vm7, %v457_v42, %v459_v41  ;;  %v224_v44 = vpop.permute.xlu1 %223 }
 0x1a6   :  { %v473_v45 = vmul.f32 %v469_v38, %v464_v43  ;;  %v230_v46 = vsel %vm229_vm8, %v224_v44, %v226_v29  ;;  %v231_v47 = vsel %vm229_vm8, %v222_v20, %v224_v44  ;;  %v697_v38 = vperm.slane %v2458_v22, 4 }
 0x1a7   :  { %v240_v48 = vmul.f32 %v236_v39, %v231_v47  ;;  %v241_v49 = vmul.f32 %v237_v40, %v230_v46  ;;  %v817_v39 = vperm.slane %v2458_v22, 5  ;;  %v700_v44 = vmul.f32 %v696_v37, %v2396_v7 }
 0x1a8   :  { %v816_v47 = vperm.slane %v2438_v13, 5 }
 0x1a9   :  { %2097 = vmatpush.msk.msra.mxu2 %vm134_vm1, %v240_v48  ;;  %2099 = vmatpush.msk.msra.mxu3 %vm134_vm1, %v241_v49  ;;  %v936_v49 = vperm.slane %v2438_v13, 6 }
 0x1aa   :  { %2098 = vmatmul.msk.f32.vlgmr.msra.gmra.mxu2 %vm263_vm6, %v210_v51 }
 0x1ab   :  { %2105 = vmatpush.msk.msrb.mxu2 %vm134_vm1, %v473_v45  ;;  %1945 = vperm.xlu1 %2205, %v1567_v50   ;;  %v701_v45 = vmul.f32 %v697_v38, %v2391_v3  ;;  %v2209_v38 = vld [vmem:[%s3330_s7 + $0x30] ss:$0 sm:$0xff] }
 0x1ac   :  { %v577_v55 = vpop.permute.xlu0 %576  ;;  %v455_v56 = vpop.permute.xlu2 %454  ;;  %2100 = vmatmul.msk.f32.vlgmr.msra.gmra.mxu3 %vm263_vm6, %v210_v51 }
 0x1ad   :  { %v465_v57 = vsel %vm462_vm7, %v455_v56, %v457_v42  ;;  %v220_v58 = vpop.permute.xlu1 %219  ;;  %v213_v42 = vld [vmem:[%s3327_s4 + $0xc] sm:$0xf] }
 0x1ae   :  { %v232_v59 = vsel %vm229_vm8, %v220_v58, %v222_v20  ;;  %v233_v60 = vsel %vm229_vm8, %v226_v29, %v220_v58  ;;  %v472_v61 = vmul.f32 %v468_v52, %v465_v57  ;;  %v935_v58 = vperm.slane %v2469_v25, 6 }
 0x1af   :  { %v238_v62 = vmul.f32 %v234_v53, %v233_v60  ;;  %v239_v63 = vmul.f32 %v235_v54, %v232_v59  ;;  %v214_v53 = vld [vmem:[%s3327_s4 + $0x10] sm:$0xf] }
 0x1b1   :  { %2093 = vmatpush.msk.msra.mxu0 %vm134_vm1, %v238_v62  ;;  %2095 = vmatpush.msk.msra.mxu1 %vm134_vm1, %v239_v63 }
 0x1b2   :  { %2094 = vmatmul.msk.f32.vlgmr.msra.gmra.mxu0 %vm263_vm6, %v210_v51  ;;  %2096 = vmatmul.msk.f32.vlgmr.msra.gmra.mxu1 %vm263_vm6, %v210_v51 }
 0x1b3   :  { %2103 = vmatpush.msk.msrb.mxu1 %vm134_vm1, %v472_v61  ;;  %1960 = vperm.xlu1 %2205, %v1570_v0  }
 0x1b4   :  { %2106 = vmatmul.msk.f32.vlgmr.msrb.gmra.mxu2 %vm263_vm6, %v212_v6  ;;  %v575_v14 = vpop.permute.xlu0 %574  ;;  %v581_v15 = vpop.permute.xlu2 %580 }
 0x1b5   :  { %v585_v16 = vsel %vm582_vm9, %v575_v14, %v577_v55  ;;  %v586_v17 = vsel %vm582_vm9, %v581_v15, %v575_v14  ;;  %v461_v18 = vpop.permute.xlu1 %460  ;;  %v937_v14 = vperm.slane %v2458_v22, 6 }
 0x1b6   :  { %v592_v20 = vmul.f32 %v588_v8, %v585_v16  ;;  %v463_v21 = vsel %vm462_vm7, %v459_v41, %v461_v18  ;;  %v466_v23 = vsel %vm462_vm7, %v461_v18, %v455_v56  ;;  %v591_v27 = vmul.f32 %v587_v9, %v586_v17  ;;  %v215_v8 = vld [vmem:[%s3327_s4 + $0x14] sm:$0xf] }
 0x1b7   :  { %v471_v28 = vmul.f32 %v467_v10, %v466_v23  ;;  %v474_v29 = vmul.f32 %v470_v12, %v463_v21  ;;  %v815_v56 = vperm.slane %v2469_v25, 5  ;;  %v1055_v10 = vperm.slane %v2469_v25, 7 }
 0x1b8   :  { %2111 = vmatpush.msk.msra.mxu1 %vm134_vm1, %v592_v20  ;;  %v934_v12 = vperm.slane %v2464_v24, 6  ;;  %v1054_v16 = vperm.slane %v2464_v24, 7 }
 0x1b9   :  { %2101 = vmatpush.msk.msrb.mxu0 %vm134_vm1, %v471_v28  ;;  %2107 = vmatpush.msk.msrb.mxu3 %vm134_vm1, %v474_v29  ;;  %v1056_v29 = vperm.slane %v2438_v13, 7 }
 0x1ba   :  { %2102 = vmatmul.msk.f32.vlgmr.msrb.gmra.mxu0 %vm263_vm6, %v212_v6  ;;  %2104 = vmatmul.msk.f32.vlgmr.msrb.gmra.mxu1 %vm263_vm6, %v212_v6 }
 0x1bb   :  { %2108 = vmatmul.msk.f32.vlgmr.msrb.gmra.mxu3 %vm263_vm6, %v212_v6  ;;  %2109 = vmatpush.msk.msra.mxu0 %vm134_vm1, %v591_v27 }
 0x1bc   :  { %2119 = vmatpush.msk.msrb.mxu1 %vm134_vm1, %v699_v30  ;;  %v802_v34 = vpop.permute.xlu0 %801  ;;  %v808_v35 = vpop.permute.xlu2 %807  ;;  %v1057_v30 = vperm.slane %v2458_v22, 7 }
 0x1bd   :  { %2117 = vmatpush.msk.msrb.mxu0 %vm134_vm1, %v698_v31  ;;  %v579_v36 = vpop.permute.xlu1 %578  ;;  %v813_v43 = vsel %vm809_vm10, %v808_v35, %v802_v34 }
 0x1be   :  { %v583_v1 = vsel %vm582_vm9, %v579_v36, %v581_v15  ;;  %v584_v2 = vsel %vm582_vm9, %v577_v55, %v579_v36  ;;  %v821_v46 = vmul.f32 %v817_v39, %v813_v43  ;;  %v814_v55 = vperm.slane %v2464_v24, 5  ;;  %v216_v24 = vld [vmem:[%s3327_s4 + $0x18] sm:$0xf]  ;;  %v2210_v43 = vld [vmem:[%s3330_s7 + $0x20] ss:$0 sm:$0xff] }
 0x1bf   :  { %v593_v40 = vmul.f32 %v589_v32, %v584_v2  ;;  %v594_v41 = vmul.f32 %v590_v33, %v583_v1  ;;  %v2208_v32 = vld [vmem:[%s3330_s7 + $0x38] ss:$0 sm:$0xff]  ;;  %v217_v2 = vld [vmem:[%s3327_s4 + $0x1c] sm:$0xf] }
 0x1c1   :  { %2113 = vmatpush.msk.msra.mxu2 %vm134_vm1, %v593_v40  ;;  %2115 = vmatpush.msk.msra.mxu3 %vm134_vm1, %v594_v41 }
 0x1c2   :  { %2110 = vmatmul.msk.f32.vlgmr.msra.gmra.mxu0 %vm263_vm6, %v213_v42  ;;  %2112 = vmatmul.msk.f32.vlgmr.msra.gmra.mxu1 %vm263_vm6, %v213_v42 }
 0x1c3   :  { %2114 = vmatmul.msk.f32.vlgmr.msra.gmra.mxu2 %vm263_vm6, %v213_v42  ;;  %2116 = vmatmul.msk.f32.vlgmr.msra.gmra.mxu3 %vm263_vm6, %v213_v42  ;;  %v218_v42 = vld [vmem:[%s3327_s4 + $0x20] sm:$0xf] }
 0x1c4   :  { %2121 = vmatpush.msk.msrb.mxu2 %vm134_vm1, %v700_v44  ;;  %2123 = vmatpush.msk.msrb.mxu3 %vm134_vm1, %v701_v45  ;;  %v928_v48 = vpop.permute.xlu0 %927  ;;  %v926_v50 = vpop.permute.xlu2 %925  ;;  %v2211_v44 = vld [vmem:[%s3330_s7 + $0x28] ss:$0 sm:$0xff] }
 0x1c5   :  { %v930_v3 = vsel %vm929_vm11, %v926_v50, %v928_v48  ;;  %v806_v7 = vpop.permute.xlu1 %805 }
 0x1c6   :  { %2131 = vmatpush.msk.msra.mxu3 %vm134_vm1, %v821_v46  ;;  %v810_v51 = vsel %vm809_vm10, %v806_v7, %v808_v35  ;;  %v940_v54 = vmul.f32 %v936_v49, %v930_v3 }
 0x1c7   :  { %v820_v52 = vmul.f32 %v816_v47, %v810_v51 }
 0x1c9   :  { %2129 = vmatpush.msk.msra.mxu2 %vm134_vm1, %v820_v52 }
 0x1ca   :  { %2118 = vmatmul.msk.f32.vlgmr.msrb.gmra.mxu0 %vm263_vm6, %v214_v53  ;;  %2120 = vmatmul.msk.f32.vlgmr.msrb.gmra.mxu1 %vm263_vm6, %v214_v53 }
 0x1cb   :  { %2122 = vmatmul.msk.f32.vlgmr.msrb.gmra.mxu2 %vm263_vm6, %v214_v53  ;;  %2124 = vmatmul.msk.f32.vlgmr.msrb.gmra.mxu3 %vm263_vm6, %v214_v53 }
 0x1cc   :  { %2137 = vmatpush.msk.msrb.mxu2 %vm134_vm1, %v940_v54  ;;  %v1046_v57 = vpop.permute.xlu0 %1045  ;;  %v924_v59 = vpop.permute.xlu2 %923 }
 0x1cd   :  { %v931_v60 = vsel %vm929_vm11, %v924_v59, %v926_v50  ;;  %v804_v61 = vpop.permute.xlu1 %803 }
 0x1ce   :  { %v811_v62 = vsel %vm809_vm10, %v804_v61, %v806_v7  ;;  %v812_v63 = vsel %vm809_vm10, %v802_v34, %v804_v61  ;;  %v939_v9 = vmul.f32 %v935_v58, %v931_v60 }
 0x1cf   :  { %v818_v0 = vmul.f32 %v814_v55, %v812_v63  ;;  %v819_v6 = vmul.f32 %v815_v56, %v811_v62 }
 0x1d1   :  { %2125 = vmatpush.msk.msra.mxu0 %vm134_vm1, %v818_v0  ;;  %2127 = vmatpush.msk.msra.mxu1 %vm134_vm1, %v819_v6 }
 0x1d2   :  { %2126 = vmatmul.msk.f32.vlgmr.msra.gmra.mxu0 %vm263_vm6, %v215_v8  ;;  %2128 = vmatmul.msk.f32.vlgmr.msra.gmra.mxu1 %vm263_vm6, %v215_v8 }
 0x1d3   :  { %2130 = vmatmul.msk.f32.vlgmr.msra.gmra.mxu2 %vm263_vm6, %v215_v8  ;;  %2132 = vmatmul.msk.f32.vlgmr.msra.gmra.mxu3 %vm263_vm6, %v215_v8 }
 0x1d4   :  { %2135 = vmatpush.msk.msrb.mxu1 %vm134_vm1, %v939_v9  ;;  %v1044_v15 = vpop.permute.xlu0 %1043  ;;  %v1042_v17 = vpop.permute.xlu2 %1041 }
 0x1d5   :  { %v1051_v18 = vsel %vm1049_vm12, %v1044_v15, %v1046_v57  ;;  %v1052_v25 = vsel %vm1049_vm12, %v1042_v17, %v1044_v15  ;;  %v922_v19 = vpop.permute.xlu1 %921 }
 0x1d6   :  { %v1059_v20 = vmul.f32 %v1055_v10, %v1051_v18  ;;  %v932_v21 = vsel %vm929_vm11, %v922_v19, %v924_v59  ;;  %v933_v23 = vsel %vm929_vm11, %v928_v48, %v922_v19  ;;  %v1058_v28 = vmul.f32 %v1054_v16, %v1052_v25 }
 0x1d7   :  { %v938_v26 = vmul.f32 %v934_v12, %v932_v21  ;;  %v941_v27 = vmul.f32 %v937_v14, %v933_v23 }
 0x1d8   :  { %2143 = vmatpush.msk.msra.mxu1 %vm134_vm1, %v1059_v20 }
 0x1d9   :  { %2133 = vmatpush.msk.msrb.mxu0 %vm134_vm1, %v938_v26  ;;  %2139 = vmatpush.msk.msrb.mxu3 %vm134_vm1, %v941_v27 }
 0x1da   :  { %2134 = vmatmul.msk.f32.vlgmr.msrb.gmra.mxu0 %vm263_vm6, %v216_v24  ;;  %2136 = vmatmul.msk.f32.vlgmr.msrb.gmra.mxu1 %vm263_vm6, %v216_v24 }
 0x1db   :  { %2138 = vmatmul.msk.f32.vlgmr.msrb.gmra.mxu2 %vm263_vm6, %v216_v24  ;;  %2140 = vmatmul.msk.f32.vlgmr.msrb.gmra.mxu3 %vm263_vm6, %v216_v24 }
 0x1dc   :  { %2141 = vmatpush.msk.msra.mxu0 %vm134_vm1, %v1058_v28  ;;  %v1162_v31 = vpop.permute.xlu0 %1161  ;;  %v1168_v33 = vpop.permute.xlu2 %1167 }
 0x1dd   :  { %v1173_v34 = vsel %vm1169_vm13, %v1168_v33, %v1162_v31  ;;  %v1048_v35 = vpop.permute.xlu1 %1047 }
 0x1de   :  { %v1050_v36 = vsel %vm1049_vm12, %v1046_v57, %v1048_v35  ;;  %v1053_v13 = vsel %vm1049_vm12, %v1048_v35, %v1042_v17  ;;  %v1181_v37 = vmul.f32 %v2208_v32, %v1173_v34 }
 0x1df   :  { %v1060_v1 = vmul.f32 %v1056_v29, %v1050_v36  ;;  %v1061_v22 = vmul.f32 %v1057_v30, %v1053_v13 }
 0x1e1   :  { %2145 = vmatpush.msk.msra.mxu2 %vm134_vm1, %v1060_v1  ;;  %2147 = vmatpush.msk.msra.mxu3 %vm134_vm1, %v1061_v22 }
 0x1e2   :  { %2142 = vmatmul.msk.f32.vlgmr.msra.gmra.mxu0 %vm263_vm6, %v217_v2  ;;  %2144 = vmatmul.msk.f32.vlgmr.msra.gmra.mxu1 %vm263_vm6, %v217_v2 }
 0x1e3   :  { %2146 = vmatmul.msk.f32.vlgmr.msra.gmra.mxu2 %vm263_vm6, %v217_v2  ;;  %2148 = vmatmul.msk.f32.vlgmr.msra.gmra.mxu3 %vm263_vm6, %v217_v2 }
 0x1e4   :  { %2155 = vmatpush.msk.msrb.mxu3 %vm134_vm1, %v1181_v37 }
 0x1e5   :  { %v1166_v39 = vpop.permute.xlu1 %1165 }
 0x1e6   :  { %v1170_v40 = vsel %vm1169_vm13, %v1166_v39, %v1168_v33 }
 0x1e7   :  { %v1180_v41 = vmul.f32 %v2209_v38, %v1170_v40 }
 0x1e9   :  { %2153 = vmatpush.msk.msrb.mxu2 %vm134_vm1, %v1180_v41 }
 0x1eb   :  { %2154 = vmatmul.msk.f32.vlgmr.msrb.gmra.mxu2 %vm263_vm6, %v218_v42  ;;  %2156 = vmatmul.msk.f32.vlgmr.msrb.gmra.mxu3 %vm263_vm6, %v218_v42 }
 0x1ed   :  { %v1164_v45 = vpop.permute.xlu1 %1163 }
 0x1ee   :  { %v1171_v46 = vsel %vm1169_vm13, %v1164_v45, %v1166_v39  ;;  %v1172_v47 = vsel %vm1169_vm13, %v1162_v31, %v1164_v45 }
 0x1ef   :  { %v1178_v48 = vmul.f32 %v2210_v43, %v1172_v47  ;;  %v1179_v49 = vmul.f32 %v2211_v44, %v1171_v46 }
 0x1f1   :  { %2149 = vmatpush.msk.msrb.mxu0 %vm134_vm1, %v1178_v48  ;;  %2151 = vmatpush.msk.msrb.mxu1 %vm134_vm1, %v1179_v49 }
 0x1f2   :  { %2150 = vmatmul.msk.f32.vlgmr.msrb.gmra.mxu0 %vm263_vm6, %v218_v42  ;;  %2152 = vmatmul.msk.f32.vlgmr.msrb.gmra.mxu1 %vm263_vm6, %v218_v42 }
 0x214   :  { %v336_v7 = vpop.f32.mrf.mxu2 }
 0x21f   :  { %v296_v50 = vpop.f32.mrf.mxu0  ;;  %v316_v3 = vpop.f32.mrf.mxu1 }
 0x226   :  { %v356_v51 = vpop.f32.mrf.mxu3 }
 0x22d   :  { %v431_v54 = vpop.f32.mrf.mxu2 }
 0x22e   :  { %v432_v25 = vadd.f32 %v431_v54, %v336_v7 }
 0x22f   :  { %v391_v52 = vpop.f32.mrf.mxu0  ;;  %v411_v53 = vpop.f32.mrf.mxu1 }
 0x230   :  { %v451_v55 = vpop.f32.mrf.mxu3  ;;  %v392_v19 = vadd.f32 %v391_v52, %v296_v50  ;;  %v412_v20 = vadd.f32 %v411_v53, %v316_v3 }
 0x231   :  { %v452_v21 = vadd.f32 %v451_v55, %v356_v51 }
 0x237   :  { %v507_v11 = vpop.f32.mrf.mxu0  ;;  %v527_v56 = vpop.f32.mrf.mxu1 }
 0x238   :  { %v547_v57 = vpop.f32.mrf.mxu2  ;;  %v570_v26 = vadd.f32 %v507_v11, %v392_v19  ;;  %v571_v27 = vadd.f32 %v527_v56, %v412_v20 }
 0x239   :  { %v572_v23 = vadd.f32 %v547_v57, %v432_v25 }
 0x23e   :  { %v567_v58 = vpop.f32.mrf.mxu3 }
 0x23f   :  { %v627_v59 = vpop.f32.mrf.mxu0  ;;  %v647_v60 = vpop.f32.mrf.mxu1  ;;  %v573_v24 = vadd.f32 %v567_v58, %v452_v21 }
 0x240   :  { %v690_v29 = vadd.f32 %v627_v59, %v570_v26  ;;  %v691_v30 = vadd.f32 %v647_v60, %v571_v27  ;;  %v1331_v27 = vpop.permute.xlu1 %1330 }
 0x246   :  { %v667_v61 = vpop.f32.mrf.mxu2  ;;  %v687_v62 = vpop.f32.mrf.mxu3 }
 0x247   :  { %v734_v63 = vpop.f32.mrf.mxu0  ;;  %v754_v0 = vpop.f32.mrf.mxu1  ;;  %v692_v28 = vadd.f32 %v667_v61, %v572_v23  ;;  %v693_v31 = vadd.f32 %v687_v62, %v573_v24 }
 0x248   :  { %v797_v13 = vadd.f32 %v734_v63, %v690_v29  ;;  %v798_v1 = vadd.f32 %v754_v0, %v691_v30 }
 0x24e   :  { %v774_v6 = vpop.f32.mrf.mxu2  ;;  %v794_v8 = vpop.f32.mrf.mxu3 }
 0x24f   :  { %v854_v9 = vpop.f32.mrf.mxu0  ;;  %v874_v10 = vpop.f32.mrf.mxu1  ;;  %v799_v34 = vadd.f32 %v774_v6, %v692_v28  ;;  %v800_v22 = vadd.f32 %v794_v8, %v693_v31 }
 0x250   :  { %v917_v37 = vadd.f32 %v854_v9, %v797_v13  ;;  %v918_v38 = vadd.f32 %v874_v10, %v798_v1 }
 0x256   :  { %v894_v12 = vpop.f32.mrf.mxu2  ;;  %v914_v14 = vpop.f32.mrf.mxu3 }
 0x257   :  { %v974_v15 = vpop.f32.mrf.mxu0  ;;  %v994_v16 = vpop.f32.mrf.mxu1  ;;  %v919_v2 = vadd.f32 %v894_v12, %v799_v34  ;;  %v920_v39 = vadd.f32 %v914_v14, %v800_v22 }
 0x258   :  { %v1037_v41 = vadd.f32 %v974_v15, %v917_v37  ;;  %v1038_v42 = vadd.f32 %v994_v16, %v918_v38 }
 0x25e   :  { %v1014_v17 = vpop.f32.mrf.mxu2  ;;  %v1034_v18 = vpop.f32.mrf.mxu3 }
 0x25f   :  { %v1094_v35 = vpop.f32.mrf.mxu0  ;;  %v1114_v36 = vpop.f32.mrf.mxu1  ;;  %v1039_v40 = vadd.f32 %v1014_v17, %v919_v2  ;;  %v1040_v43 = vadd.f32 %v1034_v18, %v920_v39 }
 0x260   :  { %v1157_v45 = vadd.f32 %v1094_v35, %v1037_v41  ;;  %v1158_v46 = vadd.f32 %v1114_v36, %v1038_v42  ;;  %v1340_v39 = vpop.permute.xlu1 %1339 }
 0x266   :  { %v1134_v32 = vpop.f32.mrf.mxu2  ;;  %v1154_v33 = vpop.f32.mrf.mxu3 }
 0x267   :  { %v1159_v44 = vadd.f32 %v1134_v32, %v1039_v40  ;;  %v1160_v47 = vadd.f32 %v1154_v33, %v1040_v43 }
 0x26e   :  { %v1254_v48 = vpop.f32.mrf.mxu2  ;;  %v1274_v49 = vpop.f32.mrf.mxu3 }
 0x26f   :  { %v1279_v50 = vadd.f32 %v1254_v48, %v1159_v44  ;;  %v1214_v3 = vpop.f32.mrf.mxu0  ;;  %v1234_v7 = vpop.f32.mrf.mxu1  ;;  %v1280_v51 = vadd.f32 %v1274_v49, %v1160_v47  ;;  %v2232_v48 = vld [vmem:[%s3323_s0 + $0x30] sm:$0xff]  ;;  %v2233_v49 = vld [vmem:[%s3323_s0 + $0x38] sm:$0xff] }
 0x270   :  { %v1277_v52 = vadd.f32 %v1214_v3, %v1157_v45  ;;  %v1278_v53 = vadd.f32 %v1234_v7, %v1158_v46  ;;  %v2236_v3 = vld [vmem:[%s3323_s0 + $0x10] sm:$0xff]  ;;  %v2237_v7 = vld [vmem:[%s3323_s0 + $0x18] sm:$0xff] }
 0x271   :  { %v1294_v54 = vmul.f32 %v1279_v50, %v1279_v50  ;;  %v1286_v59 = vsel %vm134_vm1, %v1279_v50, 0.0  ;;  %v1295_v60 = vmul.f32 %v1280_v51, %v1280_v51  ;;  %v1288_v6 = vsel %vm134_vm1, %v1280_v51, 0.0 }
 0x272   :  { %v1283_v55 = vsel %vm134_vm1, %v1277_v52, 0.0  ;;  %v1292_v11 = vmul.f32 %v1277_v52, %v1277_v52  ;;  %v1284_v56 = vsel %vm134_vm1, %v1278_v53, 0.0  ;;  %v1293_v57 = vmul.f32 %v1278_v53, %v1278_v53 }
 0x273   :  { %v1285_v58 = vadd.f32 %v1284_v56, %v1283_v55  ;;  %v1299_v8 = vsel %vm134_vm1, %v1294_v54, 0.0  ;;  %v1301_v12 = vsel %vm134_vm1, %v1295_v60, 0.0  ;;  %v1353_v54 = vld [vmem:[%s3331_s8 + $0x18] sm:$0xff]  ;;  %v1354_v56 = vld [vmem:[%s3331_s8 + $0x20] sm:$0xff] }
 0x274   :  { %v1296_v61 = vsel %vm134_vm1, %v1292_v11, 0.0  ;;  %v1297_v62 = vsel %vm134_vm1, %v1293_v57, 0.0  ;;  %v1562_v55 = vld [vmem:[%s3332_s9 + $0x18] sm:$0xff]  ;;  %v1561_v11 = vld [vmem:[%s3332_s9 + $0x10] sm:$0xff]  ;;  %v1564_v57 = vld [vmem:[%s3332_s9 + $0x28] sm:$0xff] }
 0x275   :  { %v1287_v63 = vadd.f32 %v1286_v59, %v1285_v58  ;;  %v1298_v0 = vadd.f32 %v1297_v62, %v1296_v61  ;;  %v1568_v58 = vld [vmem:[%s3333_s10 + $0x8] sm:$0xff]  ;;  %v1566_v60 = vld [vmem:[%s3332_s9 + $0x38] sm:$0xff]  ;;  %v1571_v61 = vld [vmem:[%s3333_s10 + $0x20] sm:$0xff] }
 0x276   :  { %v1355_v59 = vld [vmem:[%s3331_s8 + $0x28] sm:$0xff]  ;;  %v1356_v62 = vld [vmem:[%s3331_s8 + $0x30] sm:$0xff] }
 0x277   :  { %v1289_v9 = vadd.f32 %v1288_v6, %v1287_v63  ;;  %v1300_v10 = vadd.f32 %v1299_v8, %v1298_v0  ;;  %v1569_v63 = vld [vmem:[%s3333_s10 + $0x10] sm:$0xff]  ;;  %v1357_v0 = vld [vmem:[%s3331_s8 + $0x38] sm:$0xff] }
 0x279   :  { %1290 = vadd.xlane.f32.xlu2 %v1289_v9  ;;  %v1302_v14 = vadd.f32 %v1301_v12, %v1300_v10 }
 0x27b   :  { %1303 = vadd.xlane.f32.xlu0 %v1302_v14 }
 0x28f   :  { %1883 = vperm.xlu0 %2207, %v1561_v11  }
 0x297   :  { %1950 = vperm.xlu0 %2207, %v1568_v58  }
 0x29f   :  { %1965 = vperm.xlu0 %2207, %v1571_v61  }
 0x2ec   :  { %v1291_v15 = vpop.xlane.xlu2 %1290 }
 0x2ed   :  { %v1305_v16 = vmul.f32 0.001953125, %v1291_v15 }
 0x2ee   :  { %v1304_v17 = vpop.xlane.xlu0 %1303 }
 0x2ef   :  { %v1306_v18 = vmul.f32 0.001953125, %v1304_v17  ;;  %v1307_v25 = vmul.f32 %v1305_v16, %v1305_v16  ;;  %v1309_v30 = vsub.f32 %v1277_v52, %v1305_v16  ;;  %v1310_v31 = vsub.f32 %v1278_v53, %v1305_v16  ;;  %v1352_v52 = vld [vmem:[%s3331_s8 + $0x10] sm:$0xff]  ;;  %v1559_v53 = vld [vmem:[%s3332_s9] sm:$0xff] }
 0x2f0   :  { %v1311_v32 = vsub.f32 %v1279_v50, %v1305_v16  ;;  %v1312_v33 = vsub.f32 %v1280_v51, %v1305_v16  ;;  %v1350_v50 = vld [vmem:[%s3331_s8] sm:$0xff]  ;;  %v1351_v51 = vld [vmem:[%s3331_s8 + $0x8] sm:$0xff]  ;;  %1873 = vperm.xlu2 %2206, %v1559_v53  }
 0x2f1   :  { %v1308_v19 = vsub.f32 %v1306_v18, %v1307_v25 }
 0x2f3   :  { %v1313_v20 = vadd.f32 1e-05, %v1308_v19 }
 0x2f5   :  { %2214 = vrsqrt.f32 %v1313_v20  ;;  %vm1320_vm15 = vweird.f32 %v1313_v20 }
 0x2f8   :  { %1888 = vperm.xlu2 %2206, %v1562_v55  }
 0x2fb   :  { %v2215_v21 = vpop.eup %2214 }
 0x2fc   :  { %v1315_v23 = vmul.f32 %v2215_v21, %v1313_v20  ;;  %vm1321_vm14 = vweird.f32 %v2215_v21 }
 0x2fd   :  { %vm1322_vm0 = vmor %vm1320_vm15, %vm1321_vm14 }
 0x2fe   :  { %v1316_v26 = vmul.f32 %v2215_v21, %v1315_v23 }
 0x300   :  { %v1317_v24 = vmul.f32 0.5, %v1316_v26  ;;  %1898 = vperm.xlu2 %2206, %v1564_v57  }
 0x302   :  { %v1318_v28 = vsub.f32 1.5, %v1317_v24 }
 0x304   :  { %v1319_v29 = vmul.f32 %v2215_v21, %v1318_v28 }
 0x306   :  { %v1323_v34 = vsel %vm1322_vm0, %v2215_v21, %v1319_v29 }
 0x307   :  { %v1324_v35 = vmul.f32 %v1323_v34, %v1309_v30  ;;  %v1325_v36 = vmul.f32 %v1323_v34, %v1310_v31  ;;  %v1326_v13 = vmul.f32 %v1323_v34, %v1311_v32  ;;  %v1327_v1 = vmul.f32 %v1323_v34, %v1312_v33 }
 0x308   :  { %1908 = vperm.xlu2 %2206, %v1566_v60  }
 0x309   :  { %v1333_v22 = vmul.f32 %v1331_v27, %v1324_v35  ;;  %v1334_v2 = vmul.f32 %v1331_v27, %v1325_v36  ;;  %v1335_v37 = vmul.f32 %v1331_v27, %v1326_v13  ;;  %v1336_v38 = vmul.f32 %v1331_v27, %v1327_v1 }
 0x30b   :  { %v1342_v40 = vadd.f32 %v1340_v39, %v1333_v22  ;;  %v1343_v41 = vadd.f32 %v1340_v39, %v1334_v2  ;;  %v1344_v42 = vadd.f32 %v1340_v39, %v1335_v37  ;;  %v1345_v43 = vadd.f32 %v1340_v39, %v1336_v38 }
 0x30d   :  { %v1346_v44 = vmax.f32 %v1342_v40, 0.0  ;;  %v1347_v45 = vmax.f32 %v1343_v41, 0.0  ;;  %v1348_v46 = vmax.f32 %v1344_v42, 0.0  ;;  %v1349_v47 = vmax.f32 %v1345_v43, 0.0 }
 0x30f   :  { %2157 = vmatpush.msk.msra.mxu0 %vm134_vm1, %v1346_v44  ;;  %2166 = vmatpush.msk.msra.mxu1 %vm134_vm1, %v1347_v45 }
 0x310   :  { %2175 = vmatpush.msk.msra.mxu2 %vm134_vm1, %v1348_v46  ;;  %2184 = vmatpush.msk.msra.mxu3 %vm134_vm1, %v1349_v47 }
 0x311   :  { %1409 = vmatpush.msra.mxu0 %v2351_v4  ;;  %1450 = vmatpush.msra.mxu1 %v2356_v5  ;;  %v2234_v4 = vld [vmem:[%s3323_s0] sm:$0xff]  ;;  %v2235_v5 = vld [vmem:[%s3323_s0 + $0x8] sm:$0xff] }
 0x312   :  { %1491 = vmatpush.msra.mxu2 %v2232_v48  ;;  %1532 = vmatpush.msra.mxu3 %v2233_v49 }
 0x313   :  { %1410 = vmatpush.msra.mxu0 %v2234_v4  ;;  %1451 = vmatpush.msra.mxu1 %v2235_v5 }
 0x314   :  { %1492 = vmatpush.msra.mxu2 %v2236_v3  ;;  %1533 = vmatpush.msra.mxu3 %v2237_v7 }
 0x315   :  { %2176 = vmatmul.msk.f32.vlgmr.msra.gmra.mxu2 %vm1358_vm2, %v1350_v50  ;;  %2185 = vmatmul.msk.f32.vlgmr.msra.gmra.mxu3 %vm1358_vm2, %v1350_v50 }
 0x316   :  { %2158 = vmatmul.msk.f32.vlgmr.msra.gmra.mxu0 %vm1358_vm2, %v1350_v50  ;;  %2167 = vmatmul.msk.f32.vlgmr.msra.gmra.mxu1 %vm1358_vm2, %v1350_v50 }
 0x317   :  { %1955 = vperm.xlu2 %2206, %v1569_v63  }
 0x31d   :  { %2177 = vmatmul.msk.f32.gmra.mxu2 %vm1358_vm2, %v1351_v51  ;;  %2186 = vmatmul.msk.f32.gmra.mxu3 %vm1358_vm2, %v1351_v51 }
 0x31e   :  { %2159 = vmatmul.msk.f32.gmra.mxu0 %vm1358_vm2, %v1351_v51  ;;  %2168 = vmatmul.msk.f32.gmra.mxu1 %vm1358_vm2, %v1351_v51 }
 0x325   :  { %2178 = vmatmul.msk.f32.gmra.mxu2 %vm1358_vm2, %v1352_v52  ;;  %2187 = vmatmul.msk.f32.gmra.mxu3 %vm1358_vm2, %v1352_v52 }
 0x326   :  { %2160 = vmatmul.msk.f32.gmra.mxu0 %vm1358_vm2, %v1352_v52  ;;  %2169 = vmatmul.msk.f32.gmra.mxu1 %vm1358_vm2, %v1352_v52 }
 0x32d   :  { %2179 = vmatmul.msk.f32.gmra.mxu2 %vm1358_vm2, %v1353_v54  ;;  %2188 = vmatmul.msk.f32.gmra.mxu3 %vm1358_vm2, %v1353_v54 }
 0x32e   :  { %2161 = vmatmul.msk.f32.gmra.mxu0 %vm1358_vm2, %v1353_v54  ;;  %2170 = vmatmul.msk.f32.gmra.mxu1 %vm1358_vm2, %v1353_v54 }
 0x335   :  { %2180 = vmatmul.msk.f32.gmra.mxu2 %vm1358_vm2, %v1354_v56  ;;  %2189 = vmatmul.msk.f32.gmra.mxu3 %vm1358_vm2, %v1354_v56 }
 0x336   :  { %2162 = vmatmul.msk.f32.gmra.mxu0 %vm1358_vm2, %v1354_v56  ;;  %2171 = vmatmul.msk.f32.gmra.mxu1 %vm1358_vm2, %v1354_v56 }
 0x33d   :  { %2181 = vmatmul.msk.f32.gmra.mxu2 %vm1358_vm2, %v1355_v59  ;;  %2190 = vmatmul.msk.f32.gmra.mxu3 %vm1358_vm2, %v1355_v59 }
 0x33e   :  { %2163 = vmatmul.msk.f32.gmra.mxu0 %vm1358_vm2, %v1355_v59  ;;  %2172 = vmatmul.msk.f32.gmra.mxu1 %vm1358_vm2, %v1355_v59 }
 0x345   :  { %2182 = vmatmul.msk.f32.gmra.mxu2 %vm1358_vm2, %v1356_v62  ;;  %2191 = vmatmul.msk.f32.gmra.mxu3 %vm1358_vm2, %v1356_v62 }
 0x346   :  { %2164 = vmatmul.msk.f32.gmra.mxu0 %vm1358_vm2, %v1356_v62  ;;  %2173 = vmatmul.msk.f32.gmra.mxu1 %vm1358_vm2, %v1356_v62 }
 0x34d   :  { %2183 = vmatmul.msk.f32.gmra.mxu2 %vm1358_vm2, %v1357_v0  ;;  %2192 = vmatmul.msk.f32.gmra.mxu3 %vm1358_vm2, %v1357_v0 }
 0x34e   :  { %2165 = vmatmul.msk.f32.gmra.mxu0 %vm1358_vm2, %v1357_v0  ;;  %2174 = vmatmul.msk.f32.gmra.mxu1 %vm1358_vm2, %v1357_v0 }
 0x393   :  { %v2801_v6 = vpop.f32.mrf.mxu0  ;;  %v2803_v8 = vpop.f32.mrf.mxu1 }
 0x394   :  { %v1575_v9 = vadd.f32 %v2803_v8, %v2801_v6  ;;  %v1615_v10 = vmul.f32 %v2801_v6, %v2801_v6  ;;  %v1616_v12 = vmul.f32 %v2803_v8, %v2803_v8 }
 0x396   :  { %v1647_v20 = vadd.f32 %v1616_v12, %v1615_v10 }
 0x398   :  { %v2811_v14 = vpop.f32.mrf.mxu2  ;;  %v2813_v15 = vpop.f32.mrf.mxu3 }
 0x399   :  { %v1576_v16 = vadd.f32 %v1575_v9, %v2811_v14  ;;  %v1617_v17 = vmul.f32 %v2811_v14, %v2811_v14  ;;  %v1618_v27 = vmul.f32 %v2813_v15, %v2813_v15 }
 0x39b   :  { %v1577_v18 = vadd.f32 %v1576_v16, %v2813_v15  ;;  %v2819_v25 = vpop.f32.mrf.mxu0  ;;  %v2821_v19 = vpop.f32.mrf.mxu1  ;;  %v1648_v24 = vadd.f32 %v1647_v20, %v1617_v17 }
 0x39c   :  { %v1619_v21 = vmul.f32 %v2819_v25, %v2819_v25  ;;  %v1620_v23 = vmul.f32 %v2821_v19, %v2821_v19  ;;  %v1580_v26 = vadd.f32 %v2821_v19, %v2819_v25 }
 0x39d   :  { %1578 = vadd.xlane.f32.xlu1 %v1577_v18  ;;  %v1649_v34 = vadd.f32 %v1648_v24, %v1618_v27 }
 0x39e   :  { %v1652_v28 = vadd.f32 %v1620_v23, %v1619_v21 }
 0x3a0   :  { %v2831_v29 = vpop.f32.mrf.mxu2  ;;  %v2833_v30 = vpop.f32.mrf.mxu3 }
 0x3a1   :  { %v1621_v31 = vmul.f32 %v2831_v29, %v2831_v29  ;;  %v1581_v32 = vadd.f32 %v1580_v26, %v2831_v29  ;;  %v1622_v33 = vmul.f32 %v2833_v30, %v2833_v30 }
 0x3a3   :  { %v1582_v35 = vadd.f32 %v1581_v32, %v2833_v30  ;;  %v2841_v36 = vpop.f32.mrf.mxu0  ;;  %v2843_v13 = vpop.f32.mrf.mxu1  ;;  %v1653_v1 = vadd.f32 %v1652_v28, %v1621_v31 }
 0x3a4   :  { %v1623_v22 = vmul.f32 %v2841_v36, %v2841_v36  ;;  %v1624_v2 = vmul.f32 %v2843_v13, %v2843_v13  ;;  %v1585_v37 = vadd.f32 %v2843_v13, %v2841_v36 }
 0x3a5   :  { %1650 = vadd.xlane.f32.xlu1 %v1649_v34  ;;  %1583 = vadd.xlane.f32.xlu2 %v1582_v35  ;;  %v1654_v38 = vadd.f32 %v1653_v1, %v1622_v33 }
 0x3a6   :  { %v1657_v39 = vadd.f32 %v1624_v2, %v1623_v22 }
 0x3a7   :  { %1655 = vadd.xlane.f32.xlu0 %v1654_v38 }
 0x3a8   :  { %v2851_v40 = vpop.f32.mrf.mxu2  ;;  %v2853_v41 = vpop.f32.mrf.mxu3 }
 0x3a9   :  { %v1625_v42 = vmul.f32 %v2851_v40, %v2851_v40  ;;  %v1626_v43 = vmul.f32 %v2853_v41, %v2853_v41  ;;  %v1586_v44 = vadd.f32 %v1585_v37, %v2851_v40 }
 0x3ab   :  { %v2860_v45 = vpop.f32.mrf.mxu0  ;;  %v2862_v46 = vpop.f32.mrf.mxu1  ;;  %v1658_v47 = vadd.f32 %v1657_v39, %v1625_v42  ;;  %v1587_v5 = vadd.f32 %v1586_v44, %v2853_v41 }
 0x3ac   :  { %v1627_v48 = vmul.f32 %v2860_v45, %v2860_v45  ;;  %v1628_v49 = vmul.f32 %v2862_v46, %v2862_v46  ;;  %v1590_v50 = vadd.f32 %v2862_v46, %v2860_v45 }
 0x3ad   :  { %v1659_v4 = vadd.f32 %v1658_v47, %v1626_v43 }
 0x3ae   :  { %v1662_v3 = vadd.f32 %v1628_v49, %v1627_v48 }
 0x3af   :  { %1660 = vadd.xlane.f32.xlu2 %v1659_v4  ;;  %1588 = vadd.xlane.f32.xlu0 %v1587_v5 }
 0x3b0   :  { %v2871_v7 = vpop.f32.mrf.mxu2  ;;  %v2873_v51 = vpop.f32.mrf.mxu3 }
 0x3b1   :  { %v1629_v52 = vmul.f32 %v2871_v7, %v2871_v7  ;;  %v1591_v53 = vadd.f32 %v1590_v50, %v2871_v7  ;;  %v1630_v54 = vmul.f32 %v2873_v51, %v2873_v51 }
 0x3b3   :  { %v2880_v55 = vpop.f32.mrf.mxu0  ;;  %v2882_v11 = vpop.f32.mrf.mxu1  ;;  %v1663_v56 = vadd.f32 %v1662_v3, %v1629_v52  ;;  %v1592_v58 = vadd.f32 %v1591_v53, %v2873_v51 }
 0x3b4   :  { %v1595_v57 = vadd.f32 %v2882_v11, %v2880_v55  ;;  %v1631_v60 = vmul.f32 %v2880_v55, %v2880_v55  ;;  %v1632_v61 = vmul.f32 %v2882_v11, %v2882_v11 }
 0x3b5   :  { %v1664_v59 = vadd.f32 %v1663_v56, %v1630_v54 }
 0x3b6   :  { %v1667_v17 = vadd.f32 %v1632_v61, %v1631_v60 }
 0x3b7   :  { %1593 = vadd.xlane.f32.xlu2 %v1592_v58  ;;  %1665 = vadd.xlane.f32.xlu1 %v1664_v59 }
 0x3b8   :  { %v2891_v62 = vpop.f32.mrf.mxu2  ;;  %v2893_v63 = vpop.f32.mrf.mxu3 }
 0x3b9   :  { %v1596_v0 = vadd.f32 %v1595_v57, %v2891_v62  ;;  %v1633_v9 = vmul.f32 %v2891_v62, %v2891_v62  ;;  %v1634_v23 = vmul.f32 %v2893_v63, %v2893_v63 }
 0x3bb   :  { %v1597_v10 = vadd.f32 %v1596_v0, %v2893_v63  ;;  %v2899_v12 = vpop.f32.mrf.mxu0  ;;  %v2901_v16 = vpop.f32.mrf.mxu1  ;;  %v1668_v26 = vadd.f32 %v1667_v17, %v1633_v9 }
 0x3bc   :  { %v1600_v18 = vadd.f32 %v2901_v16, %v2899_v12  ;;  %v1635_v20 = vmul.f32 %v2899_v12, %v2899_v12  ;;  %v1636_v21 = vmul.f32 %v2901_v16, %v2901_v16 }
 0x3bd   :  { %1598 = vadd.xlane.f32.xlu0 %v1597_v10  ;;  %v1669_v32 = vadd.f32 %v1668_v26, %v1634_v23  ;;  %v2966_v23 = vpop.permute.xlu2 %1873  ;;  %v1574_v26 = vld [vmem:[%s3333_s10 + $0x38] sm:$0xff] }
 0x3be   :  { %v1672_v1 = vadd.f32 %v1636_v21, %v1635_v20  ;;  %v2961_v20 = vpop.permute.xlu1 %1878  ;;  %v1573_v21 = vld [vmem:[%s3333_s10 + $0x30] sm:$0xff] }
 0x3c0   :  { %v2911_v27 = vpop.f32.mrf.mxu2  ;;  %v2913_v24 = vpop.f32.mrf.mxu3 }
 0x3c1   :  { %v1601_v28 = vadd.f32 %v1600_v18, %v2911_v27  ;;  %v1637_v31 = vmul.f32 %v2911_v27, %v2911_v27  ;;  %v1638_v38 = vmul.f32 %v2913_v24, %v2913_v24 }
 0x3c3   :  { %v1602_v33 = vadd.f32 %v1601_v28, %v2913_v24  ;;  %v2919_v34 = vpop.f32.mrf.mxu0  ;;  %v2921_v35 = vpop.f32.mrf.mxu1  ;;  %v1673_v39 = vadd.f32 %v1672_v1, %v1637_v31  ;;  %v1572_v31 = vld [vmem:[%s3333_s10 + $0x28] sm:$0xff]  ;;  %s2273_s10 = smov [#allocation2]  }
 0x3c4   :  { %v1639_v22 = vmul.f32 %v2919_v34, %v2919_v34  ;;  %v1640_v2 = vmul.f32 %v2921_v35, %v2921_v35  ;;  %v1605_v37 = vadd.f32 %v2921_v35, %v2919_v34  ;;  %s2067_s19 = sshll.u32 %s2273_s10, 4  ;;  %s2068_s19 = int_to_ptr.vmem [resolvable:$true] %s2067_s19 }
 0x3c5   :  { %1670 = vadd.xlane.f32.xlu0 %v1669_v32  ;;  %1603 = vadd.xlane.f32.xlu2 %v1602_v33  ;;  %v1674_v50 = vadd.f32 %v1673_v39, %v1638_v38  ;;  %v2976_v32 = vpop.permute.xlu2 %1888 }
 0x3c6   :  { %v1677_v42 = vadd.f32 %v1640_v2, %v1639_v22  ;;  %v2971_v28 = vpop.permute.xlu1 %1893  ;;  %v2984_v2 = vpop.permute.xlu0 %1883 }
 0x3c8   :  { %v2931_v43 = vpop.f32.mrf.mxu2  ;;  %v2933_v44 = vpop.f32.mrf.mxu3 }
 0x3c9   :  { %v1641_v47 = vmul.f32 %v2931_v43, %v2931_v43  ;;  %v1606_v48 = vadd.f32 %v1605_v37, %v2931_v43  ;;  %v1642_v49 = vmul.f32 %v2933_v44, %v2933_v44 }
 0x3cb   :  { %v1607_v4 = vadd.f32 %v1606_v48, %v2933_v44  ;;  %v2941_v5 = vpop.f32.mrf.mxu0  ;;  %v2943_v3 = vpop.f32.mrf.mxu1  ;;  %v1678_v52 = vadd.f32 %v1677_v42, %v1641_v47 }
 0x3cc   :  { %v1643_v53 = vmul.f32 %v2941_v5, %v2941_v5  ;;  %v1644_v54 = vmul.f32 %v2943_v3, %v2943_v3  ;;  %v1610_v56 = vadd.f32 %v2943_v3, %v2941_v5 }
 0x3cd   :  { %1675 = vadd.xlane.f32.xlu2 %v1674_v50  ;;  %1608 = vadd.xlane.f32.xlu0 %v1607_v4  ;;  %v1679_v57 = vadd.f32 %v1678_v52, %v1642_v49  ;;  %v2980_v1 = vpop.permute.xlu2 %1898 }
 0x3ce   :  { %v1682_v58 = vadd.f32 %v1644_v54, %v1643_v53  ;;  %v2978_v33 = vpop.permute.xlu1 %1903  ;;  %3343 = vst [vmem:[#allocation7_spill] sm:$0xff] %v2980_v1  ;;  %v2990_v39 = vpop.permute.xlu0 %1950 }
 0x3cf   :  { %1680 = vadd.xlane.f32.xlu1 %v1679_v57  ;;  %3342 = vst [vmem:[#allocation6_spill] sm:$0xff] %v2978_v33 }
 0x3d0   :  { %v2951_v59 = vpop.f32.mrf.mxu2  ;;  %v2953_v60 = vpop.f32.mrf.mxu3 }
 0x3d1   :  { %3341 = vst [vmem:[#allocation5_spill] sm:$0xff] %v2953_v60  ;;  %v1611_v61 = vadd.f32 %v1610_v56, %v2951_v59  ;;  %v1645_v0 = vmul.f32 %v2951_v59, %v2951_v59  ;;  %v1646_v9 = vmul.f32 %v2953_v60, %v2953_v60 }
 0x3d3   :  { %v1612_v10 = vadd.f32 %v1611_v61, %v2953_v60  ;;  %v1683_v17 = vadd.f32 %v1682_v58, %v1645_v0 }
 0x3d5   :  { %1613 = vadd.xlane.f32.xlu2 %v1612_v10  ;;  %v1684_v18 = vadd.f32 %v1683_v17, %v1646_v9  ;;  %v2986_v37 = vpop.permute.xlu2 %1908 }
 0x3d6   :  { %v2982_v22 = vpop.permute.xlu1 %1945  ;;  %3344 = vst [vmem:[#allocation8_spill] sm:$0xff] %v2986_v37  ;;  %v2994_v48 = vpop.permute.xlu0 %1965 }
 0x3d7   :  { %1685 = vadd.xlane.f32.xlu0 %v1684_v18 }
 0x3dd   :  { %v2992_v42 = vpop.permute.xlu2 %1955 }
 0x3de   :  { %v2988_v38 = vpop.permute.xlu1 %1960 }
 0x3df   :  { %3345 = vst [vmem:[#allocation9_spill] sm:$0xff] %v2988_v38 }
 0x3e8   :  { %1975 = vperm.xlu1 %2205, %v1573_v21  }
 0x3eb   :  { %1980 = vperm.xlu0 %2207, %v1574_v26  }
 0x3ed   :  { %1970 = vperm.xlu2 %2206, %v1572_v31  }
 0x410   :  { %v1579_v47 = vpop.xlane.xlu1 %1578 }
 0x411   :  { %v1687_v49 = vmul.f32 0.001953125, %v1579_v47 }
 0x413   :  { %v1703_v52 = vmul.f32 %v1687_v49, %v1687_v49 }
 0x418   :  { %v1651_v50 = vpop.xlane.xlu1 %1650  ;;  %v1584_v4 = vpop.xlane.xlu2 %1583 }
 0x419   :  { %v1695_v53 = vmul.f32 0.001953125, %v1651_v50  ;;  %v2996_v54 = vmul.f32 0.001953125, %v1584_v4 }
 0x41a   :  { %v1656_v56 = vpop.xlane.xlu0 %1655 }
 0x41b   :  { %v1711_v57 = vsub.f32 %v1695_v53, %v1703_v52  ;;  %v1696_v58 = vmul.f32 0.001953125, %v1656_v56  ;;  %v1704_v61 = vmul.f32 %v2996_v54, %v2996_v54 }
 0x41d   :  { %v1751_v0 = vadd.f32 1e-05, %v1711_v57  ;;  %v1712_v9 = vsub.f32 %v1696_v58, %v1704_v61 }
 0x41f   :  { %2216 = vrsqrt.f32 %v1751_v0  ;;  %v1752_v10 = vadd.f32 1e-05, %v1712_v9  ;;  %vm1765_vm3 = vweird.f32 %v1751_v0 }
 0x421   :  { %2218 = vrsqrt.f32 %v1752_v10  ;;  %vm1775_vm5 = vweird.f32 %v1752_v10 }
 0x422   :  { %v1589_v17 = vpop.xlane.xlu0 %1588  ;;  %v1661_v18 = vpop.xlane.xlu2 %1660 }
 0x423   :  { %v3000_v21 = vmul.f32 0.001953125, %v1589_v17  ;;  %v1697_v50 = vmul.f32 0.001953125, %v1661_v18 }
 0x425   :  { %v2217_v26 = vpop.eup %2216  ;;  %v1705_v47 = vmul.f32 %v3000_v21, %v3000_v21 }
 0x426   :  { %v1760_v31 = vmul.f32 %v2217_v26, %v1751_v0  ;;  %vm1766_vm1 = vweird.f32 %v2217_v26  ;;  %v1724_v0 = vsub.f32 %v2821_v19, %v2996_v54 }
 0x427   :  { %v2219_v4 = vpop.eup %2218  ;;  %v1713_v53 = vsub.f32 %v1697_v50, %v1705_v47  ;;  %vm1767_vm4 = vmor %vm1765_vm3, %vm1766_vm1 }
 0x428   :  { %v1761_v52 = vmul.f32 %v2217_v26, %v1760_v31  ;;  %v1770_v56 = vmul.f32 %v2219_v4, %v1752_v10  ;;  %vm1776_vm6 = vweird.f32 %v2219_v4 }
 0x429   :  { %v3004_v57 = vadd.f32 1e-05, %v1713_v53  ;;  %v1719_v53 = vsub.f32 %v2801_v6, %v1687_v49  ;;  %v1725_v6 = vsub.f32 %v2831_v29, %v2996_v54  ;;  %v1728_v29 = vsub.f32 %v2843_v13, %v3000_v21  ;;  %vm1777_vm8 = vmor %vm1775_vm5, %vm1776_vm6 }
 0x42a   :  { %v1762_v38 = vmul.f32 0.5, %v1761_v52  ;;  %v1594_v58 = vpop.xlane.xlu2 %1593  ;;  %v1771_v61 = vmul.f32 %v2219_v4, %v1770_v56  ;;  %v1666_v37 = vpop.xlane.xlu1 %1665  ;;  %v1720_v56 = vsub.f32 %v2803_v8, %v1687_v49  ;;  %v1726_v8 = vsub.f32 %v2833_v30, %v2996_v54 }
 0x42b   :  { %v3006_v9 = vmul.f32 0.001953125, %v1594_v58  ;;  %2220 = vrsqrt.f32 %v3004_v57  ;;  %v1698_v18 = vmul.f32 0.001953125, %v1666_v37  ;;  %v1723_v37 = vsub.f32 %v2819_v25, %v2996_v54 }
 0x42c   :  { %v1763_v17 = vsub.f32 1.5, %v1762_v38  ;;  %v1772_v33 = vmul.f32 0.5, %v1771_v61  ;;  %v1721_v38 = vsub.f32 %v2811_v14, %v1687_v49  ;;  %v1722_v61 = vsub.f32 %v2813_v15, %v1687_v49 }
 0x42d   :  { %v1706_v31 = vmul.f32 %v3006_v9, %v3006_v9  ;;  %v1727_v49 = vsub.f32 %v2841_v36, %v3000_v21  ;;  %vm1785_vm7 = vweird.f32 %v3004_v57 }
 0x42e   :  { %v1764_v1 = vmul.f32 %v2217_v26, %v1763_v17  ;;  %v1773_v58 = vsub.f32 1.5, %v1772_v33 }
 0x42f   :  { %v1714_v50 = vsub.f32 %v1698_v18, %v1706_v31 }
 0x430   :  { %v1768_v47 = vsel %vm1767_vm4, %v2217_v26, %v1764_v1  ;;  %v1599_v52 = vpop.xlane.xlu0 %1598  ;;  %v1774_v33 = vmul.f32 %v2219_v4, %v1773_v58 }
 0x431   :  { %v3014_v60 = vpop.eup %2220  ;;  %v3021_v1 = vadd.f32 1e-05, %v1714_v50  ;;  %v1839_v26 = vmul.f32 %v1768_v47, %v1719_v53  ;;  %v1840_v17 = vmul.f32 %v1768_v47, %v1720_v56  ;;  %v1841_v14 = vmul.f32 %v1768_v47, %v1721_v38 }
 0x432   :  { %v1780_v15 = vmul.f32 %v3014_v60, %v3004_v57  ;;  %v1842_v25 = vmul.f32 %v1768_v47, %v1722_v61  ;;  %v3030_v19 = vmul.f32 0.001953125, %v1599_v52  ;;  %vm1786_vm9 = vweird.f32 %v3014_v60 }
 0x433   :  { %2222 = vrsqrt.f32 %v3021_v1  ;;  %v1911_v18 = vmul.f32 %v2966_v23, %v1839_v26  ;;  %v1912_v31 = vmul.f32 %v2966_v23, %v1840_v17  ;;  %v1913_v50 = vmul.f32 %v2966_v23, %v1841_v14  ;;  %vm1787_vm11 = vmor %vm1785_vm7, %vm1786_vm9 }
 0x434   :  { %v1781_v54 = vmul.f32 %v3014_v60, %v1780_v15  ;;  %v1914_v61 = vmul.f32 %v2966_v23, %v1842_v25  ;;  %v1778_v26 = vsel %vm1777_vm8, %v2219_v4, %v1774_v33  ;;  %v1707_v17 = vmul.f32 %v3030_v19, %v3030_v19 }
 0x435   :  { %v3061_v56 = vadd.f32 %v2982_v22, %v1911_v18  ;;  %v3064_v23 = vadd.f32 %v2982_v22, %v1912_v31  ;;  %v3069_v33 = vadd.f32 %v2982_v22, %v1913_v50  ;;  %v1844_v14 = vmul.f32 %v1778_v26, %v1724_v0 }
 0x436   :  { %v1782_v52 = vmul.f32 0.5, %v1781_v54  ;;  %v3074_v53 = vadd.f32 %v2982_v22, %v1914_v61  ;;  %vm1795_vm10 = vweird.f32 %v3021_v1  ;;  %v1845_v50 = vmul.f32 %v1778_v26, %v1725_v6 }
 0x438   :  { %v1671_v38 = vpop.xlane.xlu0 %1670  ;;  %v1604_v58 = vpop.xlane.xlu2 %1603  ;;  %v1783_v10 = vsub.f32 1.5, %v1782_v52 }
 0x439   :  { %v1699_v15 = vmul.f32 0.001953125, %v1671_v38  ;;  %v3053_v47 = vpop.eup %2222  ;;  %v3071_v52 = vmul.f32 0.001953125, %v1604_v58  ;;  %v1843_v38 = vmul.f32 %v1778_v26, %v1723_v37  ;;  %v1917_v37 = vmul.f32 %v2961_v20, %v1845_v50 }
 0x43a   :  { %v1790_v4 = vmul.f32 %v3053_v47, %v3021_v1  ;;  %v1784_v18 = vmul.f32 %v3014_v60, %v1783_v10  ;;  %v1916_v10 = vmul.f32 %v2961_v20, %v1844_v14  ;;  %vm1796_vm12 = vweird.f32 %v3053_v47 }
 0x43b   :  { %v1715_v25 = vsub.f32 %v1699_v15, %v1707_v17  ;;  %v1846_v15 = vmul.f32 %v1778_v26, %v1726_v8  ;;  %v1708_v6 = vmul.f32 %v3071_v52, %v3071_v52  ;;  %v1915_v26 = vmul.f32 %v2961_v20, %v1843_v38  ;;  %vm1797_vm13 = vmor %vm1795_vm10, %vm1796_vm12 }
 0x43c   :  { %v1791_v54 = vmul.f32 %v3053_v47, %v1790_v4  ;;  %v1739_v0 = vsub.f32 %v2899_v12, %v3071_v52  ;;  %v3131_v36 = vadd.f32 %v2990_v39, %v1916_v10 }
 0x43d   :  { %v3078_v31 = vadd.f32 1e-05, %v1715_v25  ;;  %v1918_v17 = vmul.f32 %v2961_v20, %v1846_v15 }
 0x43e   :  { %v1792_v58 = vmul.f32 0.5, %v1791_v54  ;;  %v1788_v54 = vsel %vm1787_vm11, %v3014_v60, %v1784_v18  ;;  %v1740_v60 = vsub.f32 %v2901_v16, %v3071_v52 }
 0x43f   :  { %2224 = vrsqrt.f32 %v3078_v31  ;;  %v1847_v20 = vmul.f32 %v1788_v54, %v1727_v49  ;;  %v3347_v49 = vsub.f32 %v2853_v41, %v3000_v21  ;;  %vm1805_vm14 = vweird.f32 %v3078_v31 }
 0x440   :  { %v1609_v61 = vpop.xlane.xlu0 %1608  ;;  %v1676_v8 = vpop.xlane.xlu2 %1675  ;;  %v1793_v4 = vsub.f32 1.5, %v1792_v58  ;;  %v1741_v58 = vsub.f32 %v2911_v27, %v3071_v52 }
 0x441   :  { %v3099_v25 = vmul.f32 0.001953125, %v1609_v61  ;;  %v1700_v22 = vmul.f32 0.001953125, %v1676_v8  ;;  %v3346_v8 = vsub.f32 %v2851_v40, %v3000_v21  ;;  %v3128_v61 = vadd.f32 %v2990_v39, %v1915_v26 }
 0x442   :  { %v1681_v57 = vpop.xlane.xlu1 %1680  ;;  %v1794_v18 = vmul.f32 %v3053_v47, %v1793_v4  ;;  %v3144_v40 = vadd.f32 %v2990_v39, %v1917_v37  ;;  %v1919_v21 = vmul.f32 %v2984_v2, %v1847_v20 }
 0x443   :  { %v1716_v30 = vsub.f32 %v1700_v22, %v1708_v6  ;;  %v1701_v38 = vmul.f32 0.001953125, %v1681_v57  ;;  %v1709_v14 = vmul.f32 %v3099_v25, %v3099_v25  ;;  %v1848_v6 = vmul.f32 %v1788_v54, %v1728_v29 }
 0x444   :  { %v1849_v4 = vmul.f32 %v1788_v54, %v3346_v8  ;;  %v3147_v29 = vadd.f32 %v2990_v39, %v1918_v17  ;;  %v1798_v26 = vsel %vm1797_vm13, %v3053_v47, %v1794_v18  ;;  %v1743_v39 = vsub.f32 %v2919_v34, %v3099_v25 }
 0x445   :  { %v2225_v50 = vpop.eup %2224  ;;  %v3118_v15 = vadd.f32 1e-05, %v1716_v30  ;;  %v1717_v22 = vsub.f32 %v1701_v38, %v1709_v14  ;;  %v1850_v30 = vmul.f32 %v1788_v54, %v3347_v49  ;;  %v1920_v54 = vmul.f32 %v2984_v2, %v1848_v6 }
 0x446   :  { %v1800_v57 = vmul.f32 %v2225_v50, %v3078_v31  ;;  %v1921_v37 = vmul.f32 %v2984_v2, %v1849_v4  ;;  %v1744_v47 = vsub.f32 %v2921_v35, %v3099_v25  ;;  %v3348_v6 = vsub.f32 %v2860_v45, %v3006_v9 }
 0x447   :  { %2226 = vrsqrt.f32 %v3118_v15  ;;  %v3141_v13 = vadd.f32 1e-05, %v1717_v22  ;;  %v1922_v17 = vmul.f32 %v2984_v2, %v1850_v30  ;;  %v1745_v22 = vsub.f32 %v2931_v43, %v3099_v25 }
 0x448   :  { %v1801_v10 = vmul.f32 %v2225_v50, %v1800_v57  ;;  %v1614_v41 = vpop.xlane.xlu2 %1613  ;;  %v1851_v8 = vmul.f32 %v1798_v26, %v3348_v6  ;;  %vm1806_vm15 = vweird.f32 %v2225_v50  ;;  %v3349_v49 = vsub.f32 %v2862_v46, %v3006_v9 }
 0x449   :  { %2228 = vrsqrt.f32 %v3141_v13  ;;  %v3153_v1 = vmul.f32 0.001953125, %v1614_v41  ;;  %v3175_v41 = vadd.f32 %v2992_v42, %v1919_v21  ;;  %v3181_v45 = vadd.f32 %v2992_v42, %v1921_v37  ;;  %vm1807_vm2 = vmor %vm1805_vm14, %vm1806_vm15 }
 0x44a   :  { %v1802_v38 = vmul.f32 0.5, %v1801_v10  ;;  %v1686_v14 = vpop.xlane.xlu0 %1685  ;;  %v1852_v2 = vmul.f32 %v1798_v26, %v3349_v49  ;;  %vm1815_vm0 = vweird.f32 %v3118_v15  ;;  %v3350_v46 = vsub.f32 %v2871_v7, %v3006_v9 }
 0x44b   :  { %v1702_v18 = vmul.f32 0.001953125, %v1686_v14  ;;  %v1710_v20 = vmul.f32 %v3153_v1, %v3153_v1  ;;  %v3178_v14 = vadd.f32 %v2992_v42, %v1920_v54  ;;  %v3193_v54 = vadd.f32 %v2992_v42, %v1922_v17 }
 0x44c   :  { %v1803_v4 = vsub.f32 1.5, %v1802_v38  ;;  %v1853_v49 = vmul.f32 %v1798_v26, %v3350_v46  ;;  %v3351_v37 = vsub.f32 %v2873_v51, %v3006_v9  ;;  %vm1825_vm1 = vweird.f32 %v3141_v13 }
 0x44d   :  { %v2227_v30 = vpop.eup %2226  ;;  %v1718_v10 = vsub.f32 %v1702_v18, %v1710_v20  ;;  %v3201_v20 = vmul.f32 %v2976_v32, %v1851_v8  ;;  %v3206_v31 = vmul.f32 %v2976_v32, %v1852_v2  ;;  %v3352_v42 = vsub.f32 %v2880_v55, %v3030_v19 }
 0x44e   :  { %v1804_v38 = vmul.f32 %v2225_v50, %v1803_v4  ;;  %v1810_v6 = vmul.f32 %v2227_v30, %v3118_v15  ;;  %v3198_v18 = vmul.f32 %v1798_v26, %v3351_v37  ;;  %v3353_v51 = vsub.f32 %v2882_v11, %v3030_v19 }
 0x44f   :  { %v2229_v57 = vpop.eup %2228  ;;  %v3190_v21 = vadd.f32 1e-05, %v1718_v10  ;;  %v3354_v26 = vsub.f32 %v2891_v62, %v3030_v19  ;;  %v3355_v8 = vsub.f32 %v2893_v63, %v3030_v19  ;;  %v3222_v2 = vmul.f32 %v2976_v32, %v1853_v49 }
 0x450   :  { %v1808_v4 = vsel %vm1807_vm2, %v2225_v50, %v1804_v38  ;;  %v1811_v7 = vmul.f32 %v2227_v30, %v1810_v6  ;;  %v1820_v46 = vmul.f32 %v2229_v57, %v3141_v13  ;;  %vm1816_vm3 = vweird.f32 %v2227_v30 }
 0x451   :  { %v1855_v17 = vmul.f32 %v1808_v4, %v3352_v42  ;;  %v1856_v9 = vmul.f32 %v1808_v4, %v3353_v51  ;;  %v1857_v50 = vmul.f32 %v1808_v4, %v3354_v26  ;;  %v1858_v10 = vmul.f32 %v1808_v4, %v3355_v8  ;;  %vm1817_vm5 = vmor %vm1815_vm0, %vm1816_vm3 }
 0x452   :  { %v1812_v38 = vmul.f32 0.5, %v1811_v7  ;;  %v1821_v6 = vmul.f32 %v2229_v57, %v1820_v46  ;;  %2230 = vrsqrt.f32 %v3190_v21  ;;  %v1747_v63 = vsub.f32 %v2941_v5, %v3153_v1 }
 0x453   :  { %v1927_v55 = vmul.f32 %v2971_v28, %v1855_v17  ;;  %v1928_v11 = vmul.f32 %v2971_v28, %v1856_v9  ;;  %v1929_v37 = vmul.f32 %v2971_v28, %v1857_v50  ;;  %v1930_v62 = vmul.f32 %v2971_v28, %v1858_v10 }
 0x454   :  { %v1813_v42 = vsub.f32 1.5, %v1812_v38  ;;  %v1822_v51 = vmul.f32 0.5, %v1821_v6  ;;  %vm1826_vm4 = vweird.f32 %v2229_v57  ;;  %v1748_v28 = vsub.f32 %v2943_v3, %v3153_v1 }
 0x455   :  { %v1999_v19 = vadd.f32 %v2994_v48, %v1927_v55  ;;  %v2000_v4 = vadd.f32 %v2994_v48, %v1928_v11  ;;  %v2001_v49 = vadd.f32 %v2994_v48, %v1929_v37  ;;  %v2002_v7 = vadd.f32 %v2994_v48, %v1930_v62  ;;  %v3356_v55 = vld [vmem:[#allocation5_spill] sm:$0xff]  ;;  %vm1827_vm6 = vmor %vm1825_vm1, %vm1826_vm4 }
 0x456   :  { %v1814_v46 = vmul.f32 %v2227_v30, %v1813_v42  ;;  %v1823_v17 = vsub.f32 1.5, %v1822_v51  ;;  %v1749_v6 = vsub.f32 %v2951_v59, %v3153_v1  ;;  %v1750_v11 = vsub.f32 %v3356_v55, %v3153_v1 }
 0x457   :  { %v2015_v9 = vadd.f32 %v1999_v19, %v3061_v56  ;;  %v2016_v26 = vadd.f32 %v2000_v4, %v3064_v23  ;;  %v2017_v50 = vadd.f32 %v2001_v49, %v3069_v33  ;;  %v2018_v8 = vadd.f32 %v2002_v7, %v3074_v53 }
 0x458   :  { %v2231_v10 = vpop.eup %2230  ;;  %v1818_v48 = vsel %vm1817_vm5, %v2227_v30, %v1814_v46  ;;  %v1824_v38 = vmul.f32 %v2229_v57, %v1823_v17  ;;  %vm1835_vm7 = vweird.f32 %v3190_v21 }
 0x459   :  { %v2031_v56 = vmax.f32 %v2015_v9, 0.0  ;;  %v2032_v37 = vmax.f32 %v2016_v26, 0.0  ;;  %v2033_v23 = vmax.f32 %v2017_v50, 0.0  ;;  %v2034_v62 = vmax.f32 %v2018_v8, 0.0 }
 0x45a   :  { %v1828_v53 = vsel %vm1827_vm6, %v2229_v57, %v1824_v38  ;;  %v1830_v33 = vmul.f32 %v2231_v10, %v3190_v21  ;;  %vm1836_vm8 = vweird.f32 %v2231_v10  ;;  %v1859_v15 = vmul.f32 %v1818_v48, %v1739_v0  ;;  %v3358_v0 = vld [vmem:[#allocation7_spill] sm:$0xff]  ;;  %v1976_v17 = vpop.permute.xlu1 %1975 }
 0x45b   :  { %2047 = vst [vmem:[#allocation2] sm:$0xff] %v2031_v56  ;;  %v1860_v30 = vmul.f32 %v1818_v48, %v1740_v60  ;;  %v1861_v13 = vmul.f32 %v1818_v48, %v1741_v58  ;;  %v3357_v57 = vsub.f32 %v2913_v24, %v3071_v52  ;;  %v1863_v51 = vmul.f32 %v1828_v53, %v1743_v39  ;;  %v1971_v60 = vpop.permute.xlu2 %1970  ;;  %vm1837_vm9 = vmor %vm1835_vm7, %vm1836_vm8 }
 0x45c   :  { %2048 = vst [vmem:[#allocation2 + $0x8] sm:$0xff] %v2032_v37  ;;  %v1831_v12 = vmul.f32 %v2231_v10, %v1830_v33  ;;  %v1931_v19 = vmul.f32 %v3358_v0, %v1859_v15  ;;  %v1864_v16 = vmul.f32 %v1828_v53, %v1744_v47  ;;  %v1865_v27 = vmul.f32 %v1828_v53, %v1745_v22  ;;  %v3360_v47 = vld [vmem:[#allocation6_spill] sm:$0xff] }
 0x45d   :  { %v1862_v42 = vmul.f32 %v1818_v48, %v3357_v57  ;;  %2049 = vst [vmem:[#allocation2 + $0x10] sm:$0xff] %v2033_v23  ;;  %v1932_v24 = vmul.f32 %v3358_v0, %v1860_v30  ;;  %v1933_v52 = vmul.f32 %v3358_v0, %v1861_v13  ;;  %v3359_v58 = vsub.f32 %v2933_v44, %v3099_v25  ;;  %v1981_v59 = vpop.permute.xlu0 %1980 }
 0x45e   :  { %2050 = vst [vmem:[#allocation2 + $0x18] sm:$0xff] %v2034_v62  ;;  %v1832_v4 = vmul.f32 0.5, %v1831_v12  ;;  %v2003_v35 = vadd.f32 %v1971_v60, %v1931_v19  ;;  %v1935_v49 = vmul.f32 %v3360_v47, %v1863_v51  ;;  %v1936_v43 = vmul.f32 %v3360_v47, %v1864_v16  ;;  %v3362_v12 = vld [vmem:[#allocation9_spill] sm:$0xff] }
 0x45f   :  { %v1934_v34 = vmul.f32 %v3358_v0, %v1862_v42  ;;  %v1866_v39 = vmul.f32 %v1828_v53, %v3359_v58  ;;  %v2004_v22 = vadd.f32 %v1971_v60, %v1932_v24  ;;  %v2005_v7 = vadd.f32 %v1971_v60, %v1933_v52 }
 0x460   :  { %v1937_v9 = vmul.f32 %v3360_v47, %v1865_v27  ;;  %v1833_v26 = vsub.f32 1.5, %v1832_v4  ;;  %v2019_v50 = vadd.f32 %v2003_v35, %v3128_v61  ;;  %v2007_v44 = vadd.f32 %v1976_v17, %v1935_v49 }
 0x461   :  { %v2006_v46 = vadd.f32 %v1971_v60, %v1934_v34  ;;  %v1938_v8 = vmul.f32 %v3360_v47, %v1866_v39  ;;  %v2020_v25 = vadd.f32 %v2004_v22, %v3131_v36  ;;  %v2021_v48 = vadd.f32 %v2005_v7, %v3144_v40 }
 0x462   :  { %v2008_v56 = vadd.f32 %v1976_v17, %v1936_v43  ;;  %v1834_v37 = vmul.f32 %v2231_v10, %v1833_v26  ;;  %v2035_v23 = vmax.f32 %v2019_v50, 0.0  ;;  %v2009_v62 = vadd.f32 %v1976_v17, %v1937_v9 }
 0x463   :  { %v2022_v38 = vadd.f32 %v2006_v46, %v3147_v29  ;;  %v2010_v53 = vadd.f32 %v1976_v17, %v1938_v8  ;;  %v2036_v33 = vmax.f32 %v2020_v25, 0.0  ;;  %v2037_v61 = vmax.f32 %v2021_v48, 0.0 }
 0x464   :  { %v2023_v30 = vadd.f32 %v2007_v44, %v3175_v41  ;;  %v1838_v13 = vsel %vm1837_vm9, %v2231_v10, %v1834_v37  ;;  %2051 = vst [vmem:[#allocation2 + $0x20] sm:$0xff] %v2035_v23  ;;  %v2024_v36 = vadd.f32 %v2008_v56, %v3178_v14  ;;  %v2025_v40 = vadd.f32 %v2009_v62, %v3181_v45 }
 0x465   :  { %v2038_v15 = vmax.f32 %v2022_v38, 0.0  ;;  %v2026_v29 = vadd.f32 %v2010_v53, %v3193_v54  ;;  %2052 = vst [vmem:[#allocation2 + $0x28] sm:$0xff] %v2036_v33  ;;  %v1867_v21 = vmul.f32 %v1838_v13, %v1747_v63  ;;  %v1868_v42 = vmul.f32 %v1838_v13, %v1748_v28  ;;  %v3361_v63 = vld [vmem:[#allocation8_spill] sm:$0xff] }
 0x466   :  { %v2039_v57 = vmax.f32 %v2023_v30, 0.0  ;;  %v1869_v41 = vmul.f32 %v1838_v13, %v1749_v6  ;;  %2053 = vst [vmem:[#allocation2 + $0x30] sm:$0xff] %v2037_v61  ;;  %v2040_v14 = vmax.f32 %v2024_v36, 0.0  ;;  %v2041_v10 = vmax.f32 %v2025_v40, 0.0 }
 0x467   :  { %v1870_v45 = vmul.f32 %v1838_v13, %v1750_v11  ;;  %v1926_v54 = vmul.f32 %v2976_v32, %v3198_v18  ;;  %2054 = vst [vmem:[#allocation2 + $0x38] sm:$0xff] %v2038_v15  ;;  %v2042_v5 = vmax.f32 %v2026_v29, 0.0  ;;  %v1939_v51 = vmul.f32 %v3361_v63, %v1867_v21 }
 0x468   :  { %v1940_v3 = vmul.f32 %v3361_v63, %v1868_v42  ;;  %v1941_v28 = vmul.f32 %v3361_v63, %v1869_v41  ;;  %2055 = vst [vmem:[#allocation2 + $0x40] sm:$0xff] %v2039_v57  ;;  %v1995_v0 = vadd.f32 %v3362_v12, %v3201_v20  ;;  %v1996_v1 = vadd.f32 %v3362_v12, %v3206_v31 }
 0x469   :  { %v1942_v6 = vmul.f32 %v3361_v63, %v1870_v45  ;;  %2056 = vst [vmem:[#allocation2 + $0x48] sm:$0xff] %v2040_v14  ;;  %v1997_v32 = vadd.f32 %v3362_v12, %v3222_v2  ;;  %v2011_v18 = vadd.f32 %v1981_v59, %v1939_v51  ;;  %v1998_v19 = vadd.f32 %v3362_v12, %v1926_v54 }
 0x46a   :  { %v2012_v55 = vadd.f32 %v1981_v59, %v1940_v3  ;;  %v2013_v11 = vadd.f32 %v1981_v59, %v1941_v28  ;;  %2057 = vst [vmem:[#allocation2 + $0x50] sm:$0xff] %v2041_v10 }
 0x46b   :  { %v2014_v16 = vadd.f32 %v1981_v59, %v1942_v6  ;;  %2058 = vst [vmem:[#allocation2 + $0x58] sm:$0xff] %v2042_v5  ;;  %v2027_v27 = vadd.f32 %v2011_v18, %v1995_v0 }
 0x46c   :  { %v2028_v24 = vadd.f32 %v2012_v55, %v1996_v1  ;;  %v2029_v52 = vadd.f32 %v2013_v11, %v1997_v32 }
 0x46d   :  { %v2030_v34 = vadd.f32 %v2014_v16, %v1998_v19  ;;  %v2043_v20 = vmax.f32 %v2027_v27, 0.0 }
 0x46e   :  { %v2044_v31 = vmax.f32 %v2028_v24, 0.0  ;;  %v2045_v2 = vmax.f32 %v2029_v52, 0.0 }
 0x46f   :  { %v2046_v60 = vmax.f32 %v2030_v34, 0.0  ;;  %2059 = vst [vmem:[#allocation2 + $0x60] sm:$0xff] %v2043_v20 }
 0x470   :  { %2060 = vst [vmem:[#allocation2 + $0x68] sm:$0xff] %v2044_v31 }
 0x471   :  { %2061 = vst [vmem:[#allocation2 + $0x70] sm:$0xff] %v2045_v2 }
 0x472   :  { %2062 = vst [vmem:[#allocation2 + $0x78] sm:$0xff] %v2046_v60 }
 0x473   :  { %2075 = dma.vmem_to_hbm [thread:$0]  %s2068_s19, 2048, %s2070_s22, [#allocation3], %s2274_s23, %s2274_s23, %s2275_s24  }
 0x474   :  { %2262 = dma.done.wait [#allocation3], 2048  }
 0x475   :  { %2263 = vsyncadd [#allocation3], 4294965248 }
 0x476   :  { %2080 = vsyncpa [#allocation3], 1 }

</bundles_post_ra>
